<compile_context>
chip_gen: v5e
topology: v5e:2x2
jax: 0.10.0
libtpu: 0.0.40
codegen_flags: <defaults>
</compile_context>

<pallas_src>
import functools
import math

import jax
import jax.numpy as jnp
from jax import lax
from jax.experimental import pallas as pl
from jax.experimental.pallas import tpu as pltpu

LN_EPS = 1e-5  # torch nn.LayerNorm default


def _layernorm(x, g, b):
    mu = jnp.mean(x, axis=-1, keepdims=True)
    var = jnp.mean((x - mu) ** 2, axis=-1, keepdims=True)
    return (x - mu) * lax.rsqrt(var + LN_EPS) * g + b


# --------------------------- fused transformer layers ------------------------

def fused_layers_kernel(
        # inputs -------------------------------------------------------------
        x_ref,                      # (tb, S, D)  bf16   embeddings + pos-enc
        wqkv_ref, bqkv_ref,         # (1, D, 3D) bf16 / (1, 1, 3D) f32
        wo_ref, bo_ref,             # (1, D, D)  bf16 / (1, 1, D)  f32
        g1_ref, be1_ref,            # (1, 1, D) f32
        wf1_ref, bf1_ref,           # (1, D, F) bf16 / (1, 1, F) f32
        wf2_ref, bf2_ref,           # (1, F, D) bf16 / (1, 1, D) f32
        g2_ref, be2_ref,            # (1, 1, D) f32
        # outputs ------------------------------------------------------------
        h_last_ref,                 # (tb, 1, D) f32   last-time-step hidden
        # scratch ------------------------------------------------------------
        h_ref,                      # (tb, S, D) f32   residual-stream carry
        mask_ref,                   # (S, S)     f32   additive causal bias
        *, num_heads):
    layer = pl.program_id(1)
    num_layers = pl.num_programs(1)

    tb, S, D = h_ref.shape
    H = num_heads
    hd = D // H

    @pl.when(layer == 0)
    def _init():
        h_ref[...] = x_ref[...].astype(jnp.float32)
        row = lax.broadcasted_iota(jnp.int32, (S, S), 0)
        col = lax.broadcasted_iota(jnp.int32, (S, S), 1)
        mask_ref[...] = jnp.where(col > row,
                                  jnp.float32(-1e30), jnp.float32(0.0))

    x = h_ref[...]                                  # (tb, S, D) f32 residual
    x2 = x.reshape(tb * S, D)
    xb = x2.astype(jnp.bfloat16)

    # ---- fused QKV projection: one lane-full (tb*S, D) x (D, 3D) matmul -----
    # (the 1/sqrt(hd) attention scale is pre-folded into Wq and bq)
    qkv = jnp.dot(xb, wqkv_ref[0], preferred_element_type=jnp.float32)
    qkv = qkv + bqkv_ref[0]                          # (tb*S, 3D) f32

    mask = mask_ref[...][None, :, :]                 # (1, S, S) additive bias

    head_outs = []
    for h in range(H):                               # H is small & static
        q = qkv[:, h * hd:(h + 1) * hd].reshape(tb, S, hd).astype(jnp.bfloat16)
        k = qkv[:, D + h * hd:D + (h + 1) * hd].reshape(tb, S, hd).astype(jnp.bfloat16)
        v = qkv[:, 2 * D + h * hd:2 * D + (h + 1) * hd].reshape(tb, S, hd).astype(jnp.bfloat16)

        s = jnp.einsum('bqe,bke->bqk', q, k,
                       preferred_element_type=jnp.float32) + mask   # (tb,S,S)
        m = jnp.max(s, axis=-1, keepdims=True)
        p = jnp.exp(s - m)                           # un-normalized probs
        denom = jnp.sum(p, axis=-1, keepdims=True)   # (tb, S, 1)
        o = jnp.einsum('bqk,bke->bqe', p.astype(jnp.bfloat16), v,
                       preferred_element_type=jnp.float32)           # (tb,S,hd)
        # deferred softmax normalization: scale the small (tb,S,hd) tensor.
        # TODO(synk): use approx=False if tight parity vs fp32 torch is needed.
        o = o * pl.reciprocal(denom, approx=True)
        head_outs.append(o)

    # ---- head concat on lanes + single (tb*S, D) x (D, D) output projection -
    o_cat = jnp.concatenate(head_outs, axis=-1)       # (tb, S, D) head-major
    o_flat = o_cat.reshape(tb * S, D).astype(jnp.bfloat16)
    attn = jnp.dot(o_flat, wo_ref[0], preferred_element_type=jnp.float32)
    attn = attn + bo_ref[0]

    # residual + LayerNorm 1 (dropout = identity at inference)
    h1 = _layernorm(x2 + attn, g1_ref[0], be1_ref[0])

    # ---- feed forward: Linear -> ReLU -> Linear ------------------------------
    ff = jnp.dot(h1.astype(jnp.bfloat16), wf1_ref[0],
                 preferred_element_type=jnp.float32) + bf1_ref[0]
    ff = jnp.maximum(ff, 0.0)
    ff = jnp.dot(ff.astype(jnp.bfloat16), wf2_ref[0],
                 preferred_element_type=jnp.float32) + bf2_ref[0]

    # residual + LayerNorm 2
    y = _layernorm(h1 + ff, g2_ref[0], be2_ref[0])    # (tb*S, D) f32
    y3 = y.reshape(tb, S, D)
    h_ref[...] = y3

    @pl.when(layer == num_layers - 1)
    def _emit():
        h_last_ref[...] = y3[:, S - 1:S, :]           # last time step


def _pick_batch_tile(batch):
    # prefer >= 2 batch tiles (megacore), cap the tile at 8 sequences
    for t in (8, 4, 2, 1):
        if batch % t == 0 and (batch // t) >= 2:
            return t
    return batch


def run_fused_layers(x_bf16, params, *, batch_tile=None):
    B, S, D = x_bf16.shape
    L, _, D3 = params['wqkv'].shape
    F = params['wf1'].shape[2]
    H = params['num_heads']
    tb = batch_tile if batch_tile is not None else _pick_batch_tile(B)
    assert B % tb == 0

    xmap = lambda b, l: (b, 0, 0)        # batch-tiled, fixed over layers
    wmap = lambda b, l: (l, 0, 0)        # per-layer weights streamed over l

    in_block_bytes = (tb * S * D * 2                         # x (bf16)
                      + D * D3 * 2 + D3 * 4                  # wqkv + bqkv
                      + D * D * 2 + D * 4                    # wo + bo
                      + 2 * D * 4                            # ln1
                      + D * F * 2 + F * 4                    # ff1
                      + F * D * 2 + D * 4                    # ff2
                      + 2 * D * 4)                           # ln2
    out_block_bytes = tb * D * 4
    scratch_bytes = tb * S * D * 4 + S * S * 4
    vmem_limit = int(min(max(2 * (in_block_bytes + out_block_bytes)
                             + scratch_bytes + (4 << 20), 16 << 20), 100 << 20))

    grid_spec = pltpu.PrefetchScalarGridSpec(
        num_scalar_prefetch=0,
        grid=(B // tb, L),
        in_specs=[
            pl.BlockSpec((tb, S, D), xmap),              # x
            pl.BlockSpec((1, D, D3), wmap),              # wqkv (fused Q|K|V)
            pl.BlockSpec((1, 1, D3), wmap),              # bqkv
            pl.BlockSpec((1, D, D), wmap),               # wo
            pl.BlockSpec((1, 1, D), wmap),               # bo
            pl.BlockSpec((1, 1, D), wmap),               # ln1 gamma
            pl.BlockSpec((1, 1, D), wmap),               # ln1 beta
            pl.BlockSpec((1, D, F), wmap),               # ff w1
            pl.BlockSpec((1, 1, F), wmap),               # ff b1
            pl.BlockSpec((1, F, D), wmap),               # ff w2
            pl.BlockSpec((1, 1, D), wmap),               # ff b2
            pl.BlockSpec((1, 1, D), wmap),               # ln2 gamma
            pl.BlockSpec((1, 1, D), wmap),               # ln2 beta
        ],
        out_specs=pl.BlockSpec((tb, 1, D), xmap),
        scratch_shapes=[pltpu.VMEM((tb, S, D), jnp.float32),   # residual carry
                        pltpu.VMEM((S, S), jnp.float32)],      # causal bias
    )

    return pl.pallas_call(
        functools.partial(fused_layers_kernel, num_heads=H),
        out_shape=jax.ShapeDtypeStruct((B, 1, D), jnp.float32),
        grid_spec=grid_spec,
        compiler_params=pltpu.CompilerParams(
            dimension_semantics=("parallel", "arbitrary"),
            vmem_limit_bytes=vmem_limit),
    )(x_bf16,
      params['wqkv'], params['bqkv'], params['wo'], params['bo'],
      params['g1'], params['be1'],
      params['wf1'], params['bf1'], params['wf2'], params['bf2'],
      params['g2'], params['be2'])


# ------------------------- vocab-tiled output projection ---------------------

def output_projection_kernel(h_ref, w_ref, b_ref, out_ref):
    out_ref[...] = (jnp.dot(h_ref[...].astype(jnp.bfloat16), w_ref[...],
                            preferred_element_type=jnp.float32)
                    + b_ref[...])


def run_output_projection(h_last, w_out, b_out):
    B, D = h_last.shape
    Npad = w_out.shape[1]
    tn = 128
    for cand in (2048, 1024, 512, 256, 128):
        if Npad % cand == 0:
            tn = cand
            break

    vmem_limit = int(min(max(2 * (B * D * 4 + D * tn * 2 + tn * 4 + B * tn * 4)
                             + (4 << 20), 16 << 20), 100 << 20))

    grid_spec = pltpu.PrefetchScalarGridSpec(
        num_scalar_prefetch=0,
        grid=(Npad // tn,),
        in_specs=[
            pl.BlockSpec((B, D), lambda j: (0, 0)),      # last-step hidden
            pl.BlockSpec((D, tn), lambda j: (0, j)),     # vocab tile of w_out
            pl.BlockSpec((1, tn), lambda j: (0, j)),     # b_out tile
        ],
        out_specs=pl.BlockSpec((B, tn), lambda j: (0, j)),
    )

    return pl.pallas_call(
        output_projection_kernel,
        out_shape=jax.ShapeDtypeStruct((B, Npad), jnp.float32),
        grid_spec=grid_spec,
        compiler_params=pltpu.CompilerParams(
            dimension_semantics=("parallel",),
            vmem_limit_bytes=vmem_limit),
    )(h_last, w_out, b_out)


# ------------------------- parameter construction ---------------------------

def xavier_normal(key, shape):
    fan_in, fan_out = shape[0], shape[1]
    std = math.sqrt(2.0 / (fan_in + fan_out))
    return jax.random.normal(key, shape, jnp.float32) * std


def make_positional_encoding(max_len, d_model):
    position = jnp.arange(max_len, dtype=jnp.float32)[:, None]
    div_term = jnp.exp(jnp.arange(0, d_model, 2, dtype=jnp.float32)
                       * (-math.log(10000.0) / d_model))
    pe = jnp.zeros((max_len, d_model), jnp.float32)
    pe = pe.at[:, 0::2].set(jnp.sin(position * div_term))
    pe = pe.at[:, 1::2].set(jnp.cos(position * div_term))
    return pe


def init_params(key, num_items, d_model, num_heads, num_layers, d_ff, max_seq_len):
    assert d_model % num_heads == 0
    hd = d_model // num_heads
    scale = 1.0 / math.sqrt(hd)
    n_pad = ((num_items + 127) // 128) * 128
    bf16 = jnp.bfloat16

    keys = jax.random.split(key, 2 + 4 * num_layers)
    emb = xavier_normal(keys[0], (num_items + 1, d_model))
    emb = emb.at[0].set(0.0)                                 # padding_idx = 0

    wqkv_l, bqkv_l, wo_l, bo_l = [], [], [], []
    g1_l, be1_l, wf1_l, bf1_l, wf2_l, bf2_l, g2_l, be2_l = ([] for _ in range(8))
    for l in range(num_layers):
        k_in, k_o, k_f1, k_f2 = keys[1 + 4 * l: 5 + 4 * l]
        w_in = xavier_normal(k_in, (d_model, 3 * d_model))   # [Wq^T|Wk^T|Wv^T]
        b_in = jnp.zeros((1, 3 * d_model), jnp.float32)
        # fold the 1/sqrt(head_dim) attention scale into BOTH Wq and bq
        w_in = w_in.at[:, :d_model].multiply(scale)
        b_in = b_in.at[:, :d_model].multiply(scale)
        wqkv_l.append(w_in)
        bqkv_l.append(b_in)
        wo_l.append(xavier_normal(k_o, (d_model, d_model)))
        bo_l.append(jnp.zeros((1, d_model), jnp.float32))
        g1_l.append(jnp.ones((1, d_model), jnp.float32))
        be1_l.append(jnp.zeros((1, d_model), jnp.float32))
        wf1_l.append(xavier_normal(k_f1, (d_model, d_ff)))
        bf1_l.append(jnp.zeros((1, d_ff), jnp.float32))
        wf2_l.append(xavier_normal(k_f2, (d_ff, d_model)))
        bf2_l.append(jnp.zeros((1, d_model), jnp.float32))
        g2_l.append(jnp.ones((1, d_model), jnp.float32))
        be2_l.append(jnp.zeros((1, d_model), jnp.float32))

    w_out = xavier_normal(keys[-1], (d_model, num_items))
    w_out = jnp.pad(w_out, ((0, 0), (0, n_pad - num_items)))  # lane-dense logits
    b_out = jnp.zeros((1, n_pad), jnp.float32)
    pe = make_positional_encoding(max_seq_len, d_model)

    return dict(
        emb=emb, pe=pe, num_heads=num_heads,
        wqkv=jnp.stack(wqkv_l).astype(bf16), bqkv=jnp.stack(bqkv_l),
        wo=jnp.stack(wo_l).astype(bf16),     bo=jnp.stack(bo_l),
        g1=jnp.stack(g1_l),                  be1=jnp.stack(be1_l),
        wf1=jnp.stack(wf1_l).astype(bf16),   bf1=jnp.stack(bf1_l),
        wf2=jnp.stack(wf2_l).astype(bf16),   bf2=jnp.stack(bf2_l),
        g2=jnp.stack(g2_l),                  be2=jnp.stack(be2_l),
        w_out=w_out.astype(bf16),            b_out=b_out,
    )


# ------------------------------ forward pass --------------------------------

def forward(sequences, params, num_items):
    B, S = sequences.shape
    D = params['emb'].shape[1]

    # embedding gather + scale + positional encoding (plain-JAX glue)
    x = params['emb'][sequences] * math.sqrt(D)                # (B, S, D)
    x = x + params['pe'][:S][None, :, :]
    # dropout omitted (inference identity); the reference's padding_mask is
    # computed but never applied in forward(), so it is not applied here.
    x = x.astype(jnp.bfloat16)

    h_last = run_fused_layers(x, params)                       # (B, 1, D) f32
    logits_padded = run_output_projection(h_last.reshape(B, D),
                                          params['w_out'], params['b_out'])
    return logits_padded[:, :num_items]                        # (B, num_items)


if __name__ == "__main__":
    NUM_ITEMS = 64
    D_MODEL = 32
    NUM_HEADS = 4
    NUM_LAYERS = 2
    D_FF = 64
    MAX_SEQ_LEN = 16
    BATCH = 2
    SEQ_LEN = 8

    key = jax.random.PRNGKey(0)
    k_param, k_seq = jax.random.split(key)

    params = init_params(k_param, NUM_ITEMS, D_MODEL, NUM_HEADS,
                         NUM_LAYERS, D_FF, MAX_SEQ_LEN)

    sequences = jax.random.randint(k_seq, (BATCH, SEQ_LEN), 1, NUM_ITEMS + 1,
                                   dtype=jnp.int32)

    logits = forward(sequences, params, NUM_ITEMS)
    logits = jax.block_until_ready(logits)

    assert logits.shape == (BATCH, NUM_ITEMS)
    assert bool(jnp.all(jnp.isfinite(logits)))
    print("KERNEL_OK")
</pallas_src>

<mosaic_0001>
module attributes {stable_mosaic.version = 11 : i64} {
  func.func @fused_layers_kernel(%arg0: i32, %arg1: i32, %arg2: memref<1x8x32xbf16, #tpu.memory_space<vmem>>, %arg3: memref<1x32x96xbf16, #tpu.memory_space<vmem>>, %arg4: memref<1x1x96xf32, #tpu.memory_space<vmem>>, %arg5: memref<1x32x32xbf16, #tpu.memory_space<vmem>>, %arg6: memref<1x1x32xf32, #tpu.memory_space<vmem>>, %arg7: memref<1x1x32xf32, #tpu.memory_space<vmem>>, %arg8: memref<1x1x32xf32, #tpu.memory_space<vmem>>, %arg9: memref<1x32x64xbf16, #tpu.memory_space<vmem>>, %arg10: memref<1x1x64xf32, #tpu.memory_space<vmem>>, %arg11: memref<1x64x32xbf16, #tpu.memory_space<vmem>>, %arg12: memref<1x1x32xf32, #tpu.memory_space<vmem>>, %arg13: memref<1x1x32xf32, #tpu.memory_space<vmem>>, %arg14: memref<1x1x32xf32, #tpu.memory_space<vmem>>, %arg15: memref<1x1x32xf32, #tpu.memory_space<vmem>>, %arg16: memref<1x8x32xf32, #tpu.memory_space<vmem>>, %arg17: memref<8x8xf32, #tpu.memory_space<vmem>>) attributes {dimension_semantics = [#tpu.dimension_semantics<parallel>, #tpu.dimension_semantics<arbitrary>], iteration_bounds = array<i64: 2, 2>, scalar_prefetch = 0 : i64, scratch_operands = 2 : i64, tpu.core_type = #tpu.core_type<tc>, window_params = [{transform_indices = @transform_0, window_bounds = array<i64: 1, 8, 32>}, {transform_indices = @transform_1, window_bounds = array<i64: 1, 32, 96>}, {transform_indices = @transform_2, window_bounds = array<i64: 1, 1, 96>}, {transform_indices = @transform_3, window_bounds = array<i64: 1, 32, 32>}, {transform_indices = @transform_4, window_bounds = array<i64: 1, 1, 32>}, {transform_indices = @transform_5, window_bounds = array<i64: 1, 1, 32>}, {transform_indices = @transform_6, window_bounds = array<i64: 1, 1, 32>}, {transform_indices = @transform_7, window_bounds = array<i64: 1, 32, 64>}, {transform_indices = @transform_8, window_bounds = array<i64: 1, 1, 64>}, {transform_indices = @transform_9, window_bounds = array<i64: 1, 64, 32>}, {transform_indices = @transform_10, window_bounds = array<i64: 1, 1, 32>}, {transform_indices = @transform_11, window_bounds = array<i64: 1, 1, 32>}, {transform_indices = @transform_12, window_bounds = array<i64: 1, 1, 32>}, {transform_indices = @transform_13, window_bounds = array<i64: 1, 1, 32>}]} {
    %c0_i32 = arith.constant 0 : i32
    %0 = arith.cmpi eq, %arg1, %c0_i32 : i32
    %1 = arith.extui %0 : i1 to i32
    %c0_i32_0 = arith.constant 0 : i32
    %2 = arith.cmpi ne, %1, %c0_i32_0 : i32
    scf.if %2 {
      %c0_75 = arith.constant 0 : index
      %c0_76 = arith.constant 0 : index
      %c0_77 = arith.constant 0 : index
      %194 = vector.load %arg2[%c0_75, %c0_76, %c0_77] : memref<1x8x32xbf16, #tpu.memory_space<vmem>>, vector<1x8x32xbf16>
      %195 = arith.extf %194 : vector<1x8x32xbf16> to vector<1x8x32xf32>
      %c0_78 = arith.constant 0 : index
      %c0_79 = arith.constant 0 : index
      %c0_80 = arith.constant 0 : index
      %196 = vector.load %arg16[%c0_78, %c0_79, %c0_80] : memref<1x8x32xf32, #tpu.memory_space<vmem>>, vector<1x8x32xf32>
      tpu.vector_store %arg16[%c0_78, %c0_79, %c0_80], %195 {strides = array<i32>} : memref<1x8x32xf32, #tpu.memory_space<vmem>>, vector<1x8x32xf32>,
      %197 = tpu.iota {dimensions = array<i32: 0>} : vector<8x8xi32>
      %198 = tpu.iota {dimensions = array<i32: 1>} : vector<8x8xi32>
      %199 = arith.cmpi sgt, %198, %197 : vector<8x8xi32>
      %cst_81 = arith.constant -1.000000e+30 : f32
      %cst_82 = arith.constant 0.000000e+00 : f32
      %200 = vector.broadcast %cst_81 : f32 to vector<8x8xf32>
      %201 = vector.broadcast %cst_82 : f32 to vector<8x8xf32>
      %202 = arith.select %199, %200, %201 : vector<8x8xi1>, vector<8x8xf32>
      %c0_83 = arith.constant 0 : index
      %c0_84 = arith.constant 0 : index
      %203 = vector.load %arg17[%c0_83, %c0_84] : memref<8x8xf32, #tpu.memory_space<vmem>>, vector<8x8xf32>
      tpu.vector_store %arg17[%c0_83, %c0_84], %202 {strides = array<i32>} : memref<8x8xf32, #tpu.memory_space<vmem>>, vector<8x8xf32>,
    } else {
    }
    %c0 = arith.constant 0 : index
    %c0_1 = arith.constant 0 : index
    %c0_2 = arith.constant 0 : index
    %3 = vector.load %arg16[%c0, %c0_1, %c0_2] : memref<1x8x32xf32, #tpu.memory_space<vmem>>, vector<1x8x32xf32>
    %4 = vector.shape_cast %3 : vector<1x8x32xf32> to vector<8x32xf32>
    %5 = arith.truncf %4 : vector<8x32xf32> to vector<8x32xbf16>
    %c0_3 = arith.constant 0 : index
    %c0_4 = arith.constant 0 : index
    %c0_5 = arith.constant 0 : index
    %6 = vector.load %arg3[%c0_3, %c0_4, %c0_5] : memref<1x32x96xbf16, #tpu.memory_space<vmem>>, vector<1x32x96xbf16>
    %7 = vector.shape_cast %6 : vector<1x32x96xbf16> to vector<32x96xbf16>
    %cst = arith.constant dense<0.000000e+00> : vector<8x96xf32>
    %8 = tpu.matmul %5, %7, %cst {dimension_numbers = #tpu.dot_dimension_numbers<[1], [0], [0], [1], [0, 0, 1, 1], [], []>} : vector<8x32xbf16>, vector<32x96xbf16>, vector<8x96xf32> -> vector<8x96xf32>
    %c0_6 = arith.constant 0 : index
    %c0_7 = arith.constant 0 : index
    %c0_8 = arith.constant 0 : index
    %9 = vector.load %arg4[%c0_6, %c0_7, %c0_8] : memref<1x1x96xf32, #tpu.memory_space<vmem>>, vector<1x1x96xf32>
    %10 = vector.shape_cast %9 : vector<1x1x96xf32> to vector<1x96xf32>
    %11 = vector.broadcast %10 : vector<1x96xf32> to vector<8x96xf32>
    %12 = arith.addf %8, %11 : vector<8x96xf32>
    %c0_9 = arith.constant 0 : index
    %c0_10 = arith.constant 0 : index
    %13 = vector.load %arg17[%c0_9, %c0_10] : memref<8x8xf32, #tpu.memory_space<vmem>>, vector<8x8xf32>
    %14 = vector.shape_cast %13 : vector<8x8xf32> to vector<1x8x8xf32>
    %15 = vector.extract_strided_slice %12 {offsets = [0, 0], sizes = [8, 8], strides = [1, 1]} : vector<8x96xf32> to vector<8x8xf32>
    %16 = vector.shape_cast %15 : vector<8x8xf32> to vector<1x8x8xf32>
    %17 = arith.truncf %16 : vector<1x8x8xf32> to vector<1x8x8xbf16>
    %18 = vector.extract_strided_slice %12 {offsets = [0, 32], sizes = [8, 8], strides = [1, 1]} : vector<8x96xf32> to vector<8x8xf32>
    %19 = vector.shape_cast %18 : vector<8x8xf32> to vector<1x8x8xf32>
    %20 = arith.truncf %19 : vector<1x8x8xf32> to vector<1x8x8xbf16>
    %21 = vector.extract_strided_slice %12 {offsets = [0, 64], sizes = [8, 8], strides = [1, 1]} : vector<8x96xf32> to vector<8x8xf32>
    %22 = vector.shape_cast %21 : vector<8x8xf32> to vector<1x8x8xf32>
    %23 = arith.truncf %22 : vector<1x8x8xf32> to vector<1x8x8xbf16>
    "tpu.trace_start"() <{level = 10 : i32, message = "bqe,bke->bqk"}> : () -> ()
    %cst_11 = arith.constant dense<0.000000e+00> : vector<1x8x8xf32>
    %24 = tpu.matmul %17, %20, %cst_11 {dimension_numbers = #tpu.dot_dimension_numbers<[2], [2], [1], [1], [0, 0, 0, 1, 1, 1], [0], [0]>} : vector<1x8x8xbf16>, vector<1x8x8xbf16>, vector<1x8x8xf32> -> vector<1x8x8xf32>
    "tpu.trace_stop"() : () -> ()
    %25 = arith.addf %24, %14 : vector<1x8x8xf32>
    %cst_12 = arith.constant dense<0xFF800000> : vector<1x8xf32>
    %26 = vector.multi_reduction <maximumf>, %25, %cst_12 [2] : vector<1x8x8xf32> to vector<1x8xf32>
    %27 = vector.shape_cast %26 : vector<1x8xf32> to vector<1x8x1xf32>
    %28 = vector.broadcast %27 : vector<1x8x1xf32> to vector<1x8x8xf32>
    %29 = arith.subf %25, %28 : vector<1x8x8xf32>
    %30 = math.exp %29 : vector<1x8x8xf32>
    %cst_13 = arith.constant dense<0.000000e+00> : vector<1x8xf32>
    %31 = vector.multi_reduction <add>, %30, %cst_13 [2] : vector<1x8x8xf32> to vector<1x8xf32>
    %32 = vector.shape_cast %31 : vector<1x8xf32> to vector<1x8x1xf32>
    %33 = arith.truncf %30 : vector<1x8x8xf32> to vector<1x8x8xbf16>
    "tpu.trace_start"() <{level = 10 : i32, message = "bqk,bke->bqe"}> : () -> ()
    %cst_14 = arith.constant dense<0.000000e+00> : vector<1x8x8xf32>
    %34 = tpu.matmul %33, %23, %cst_14 {dimension_numbers = #tpu.dot_dimension_numbers<[2], [1], [1], [2], [0, 0, 0, 1, 1, 2], [0], [0]>} : vector<1x8x8xbf16>, vector<1x8x8xbf16>, vector<1x8x8xf32> -> vector<1x8x8xf32>
    "tpu.trace_stop"() : () -> ()
    %35 = tpu.reciprocal %32 {approx = true} : vector<1x8x1xf32> -> vector<1x8x1xf32>
    %36 = vector.broadcast %35 : vector<1x8x1xf32> to vector<1x8x8xf32>
    %37 = arith.mulf %34, %36 : vector<1x8x8xf32>
    %38 = vector.extract_strided_slice %12 {offsets = [0, 8], sizes = [8, 8], strides = [1, 1]} : vector<8x96xf32> to vector<8x8xf32>
    %39 = vector.shape_cast %38 : vector<8x8xf32> to vector<1x8x8xf32>
    %40 = arith.truncf %39 : vector<1x8x8xf32> to vector<1x8x8xbf16>
    %41 = vector.extract_strided_slice %12 {offsets = [0, 40], sizes = [8, 8], strides = [1, 1]} : vector<8x96xf32> to vector<8x8xf32>
    %42 = vector.shape_cast %41 : vector<8x8xf32> to vector<1x8x8xf32>
    %43 = arith.truncf %42 : vector<1x8x8xf32> to vector<1x8x8xbf16>
    %44 = vector.extract_strided_slice %12 {offsets = [0, 72], sizes = [8, 8], strides = [1, 1]} : vector<8x96xf32> to vector<8x8xf32>
    %45 = vector.shape_cast %44 : vector<8x8xf32> to vector<1x8x8xf32>
    %46 = arith.truncf %45 : vector<1x8x8xf32> to vector<1x8x8xbf16>
    "tpu.trace_start"() <{level = 10 : i32, message = "bqe,bke->bqk"}> : () -> ()
    %cst_15 = arith.constant dense<0.000000e+00> : vector<1x8x8xf32>
    %47 = tpu.matmul %40, %43, %cst_15 {dimension_numbers = #tpu.dot_dimension_numbers<[2], [2], [1], [1], [0, 0, 0, 1, 1, 1], [0], [0]>} : vector<1x8x8xbf16>, vector<1x8x8xbf16>, vector<1x8x8xf32> -> vector<1x8x8xf32>
    "tpu.trace_stop"() : () -> ()
    %48 = arith.addf %47, %14 : vector<1x8x8xf32>
    %cst_16 = arith.constant dense<0xFF800000> : vector<1x8xf32>
    %49 = vector.multi_reduction <maximumf>, %48, %cst_16 [2] : vector<1x8x8xf32> to vector<1x8xf32>
    %50 = vector.shape_cast %49 : vector<1x8xf32> to vector<1x8x1xf32>
    %51 = vector.broadcast %50 : vector<1x8x1xf32> to vector<1x8x8xf32>
    %52 = arith.subf %48, %51 : vector<1x8x8xf32>
    %53 = math.exp %52 : vector<1x8x8xf32>
    %cst_17 = arith.constant dense<0.000000e+00> : vector<1x8xf32>
    %54 = vector.multi_reduction <add>, %53, %cst_17 [2] : vector<1x8x8xf32> to vector<1x8xf32>
    %55 = vector.shape_cast %54 : vector<1x8xf32> to vector<1x8x1xf32>
    %56 = arith.truncf %53 : vector<1x8x8xf32> to vector<1x8x8xbf16>
    "tpu.trace_start"() <{level = 10 : i32, message = "bqk,bke->bqe"}> : () -> ()
    %cst_18 = arith.constant dense<0.000000e+00> : vector<1x8x8xf32>
    %57 = tpu.matmul %56, %46, %cst_18 {dimension_numbers = #tpu.dot_dimension_numbers<[2], [1], [1], [2], [0, 0, 0, 1, 1, 2], [0], [0]>} : vector<1x8x8xbf16>, vector<1x8x8xbf16>, vector<1x8x8xf32> -> vector<1x8x8xf32>
    "tpu.trace_stop"() : () -> ()
    %58 = tpu.reciprocal %55 {approx = true} : vector<1x8x1xf32> -> vector<1x8x1xf32>
    %59 = vector.broadcast %58 : vector<1x8x1xf32> to vector<1x8x8xf32>
    %60 = arith.mulf %57, %59 : vector<1x8x8xf32>
    %61 = vector.extract_strided_slice %12 {offsets = [0, 16], sizes = [8, 8], strides = [1, 1]} : vector<8x96xf32> to vector<8x8xf32>
    %62 = vector.shape_cast %61 : vector<8x8xf32> to vector<1x8x8xf32>
    %63 = arith.truncf %62 : vector<1x8x8xf32> to vector<1x8x8xbf16>
    %64 = vector.extract_strided_slice %12 {offsets = [0, 48], sizes = [8, 8], strides = [1, 1]} : vector<8x96xf32> to vector<8x8xf32>
    %65 = vector.shape_cast %64 : vector<8x8xf32> to vector<1x8x8xf32>
    %66 = arith.truncf %65 : vector<1x8x8xf32> to vector<1x8x8xbf16>
    %67 = vector.extract_strided_slice %12 {offsets = [0, 80], sizes = [8, 8], strides = [1, 1]} : vector<8x96xf32> to vector<8x8xf32>
    %68 = vector.shape_cast %67 : vector<8x8xf32> to vector<1x8x8xf32>
    %69 = arith.truncf %68 : vector<1x8x8xf32> to vector<1x8x8xbf16>
    "tpu.trace_start"() <{level = 10 : i32, message = "bqe,bke->bqk"}> : () -> ()
    %cst_19 = arith.constant dense<0.000000e+00> : vector<1x8x8xf32>
    %70 = tpu.matmul %63, %66, %cst_19 {dimension_numbers = #tpu.dot_dimension_numbers<[2], [2], [1], [1], [0, 0, 0, 1, 1, 1], [0], [0]>} : vector<1x8x8xbf16>, vector<1x8x8xbf16>, vector<1x8x8xf32> -> vector<1x8x8xf32>
    "tpu.trace_stop"() : () -> ()
    %71 = arith.addf %70, %14 : vector<1x8x8xf32>
    %cst_20 = arith.constant dense<0xFF800000> : vector<1x8xf32>
    %72 = vector.multi_reduction <maximumf>, %71, %cst_20 [2] : vector<1x8x8xf32> to vector<1x8xf32>
    %73 = vector.shape_cast %72 : vector<1x8xf32> to vector<1x8x1xf32>
    %74 = vector.broadcast %73 : vector<1x8x1xf32> to vector<1x8x8xf32>
    %75 = arith.subf %71, %74 : vector<1x8x8xf32>
    %76 = math.exp %75 : vector<1x8x8xf32>
    %cst_21 = arith.constant dense<0.000000e+00> : vector<1x8xf32>
    %77 = vector.multi_reduction <add>, %76, %cst_21 [2] : vector<1x8x8xf32> to vector<1x8xf32>
    %78 = vector.shape_cast %77 : vector<1x8xf32> to vector<1x8x1xf32>
    %79 = arith.truncf %76 : vector<1x8x8xf32> to vector<1x8x8xbf16>
    "tpu.trace_start"() <{level = 10 : i32, message = "bqk,bke->bqe"}> : () -> ()
    %cst_22 = arith.constant dense<0.000000e+00> : vector<1x8x8xf32>
    %80 = tpu.matmul %79, %69, %cst_22 {dimension_numbers = #tpu.dot_dimension_numbers<[2], [1], [1], [2], [0, 0, 0, 1, 1, 2], [0], [0]>} : vector<1x8x8xbf16>, vector<1x8x8xbf16>, vector<1x8x8xf32> -> vector<1x8x8xf32>
    "tpu.trace_stop"() : () -> ()
    %81 = tpu.reciprocal %78 {approx = true} : vector<1x8x1xf32> -> vector<1x8x1xf32>
    %82 = vector.broadcast %81 : vector<1x8x1xf32> to vector<1x8x8xf32>
    %83 = arith.mulf %80, %82 : vector<1x8x8xf32>
    %84 = vector.extract_strided_slice %12 {offsets = [0, 24], sizes = [8, 8], strides = [1, 1]} : vector<8x96xf32> to vector<8x8xf32>
    %85 = vector.shape_cast %84 : vector<8x8xf32> to vector<1x8x8xf32>
    %86 = arith.truncf %85 : vector<1x8x8xf32> to vector<1x8x8xbf16>
    %87 = vector.extract_strided_slice %12 {offsets = [0, 56], sizes = [8, 8], strides = [1, 1]} : vector<8x96xf32> to vector<8x8xf32>
    %88 = vector.shape_cast %87 : vector<8x8xf32> to vector<1x8x8xf32>
    %89 = arith.truncf %88 : vector<1x8x8xf32> to vector<1x8x8xbf16>
    %90 = vector.extract_strided_slice %12 {offsets = [0, 88], sizes = [8, 8], strides = [1, 1]} : vector<8x96xf32> to vector<8x8xf32>
    %91 = vector.shape_cast %90 : vector<8x8xf32> to vector<1x8x8xf32>
    %92 = arith.truncf %91 : vector<1x8x8xf32> to vector<1x8x8xbf16>
    "tpu.trace_start"() <{level = 10 : i32, message = "bqe,bke->bqk"}> : () -> ()
    %cst_23 = arith.constant dense<0.000000e+00> : vector<1x8x8xf32>
    %93 = tpu.matmul %86, %89, %cst_23 {dimension_numbers = #tpu.dot_dimension_numbers<[2], [2], [1], [1], [0, 0, 0, 1, 1, 1], [0], [0]>} : vector<1x8x8xbf16>, vector<1x8x8xbf16>, vector<1x8x8xf32> -> vector<1x8x8xf32>
    "tpu.trace_stop"() : () -> ()
    %94 = arith.addf %93, %14 : vector<1x8x8xf32>
    %cst_24 = arith.constant dense<0xFF800000> : vector<1x8xf32>
    %95 = vector.multi_reduction <maximumf>, %94, %cst_24 [2] : vector<1x8x8xf32> to vector<1x8xf32>
    %96 = vector.shape_cast %95 : vector<1x8xf32> to vector<1x8x1xf32>
    %97 = vector.broadcast %96 : vector<1x8x1xf32> to vector<1x8x8xf32>
    %98 = arith.subf %94, %97 : vector<1x8x8xf32>
    %99 = math.exp %98 : vector<1x8x8xf32>
    %cst_25 = arith.constant dense<0.000000e+00> : vector<1x8xf32>
    %100 = vector.multi_reduction <add>, %99, %cst_25 [2] : vector<1x8x8xf32> to vector<1x8xf32>
    %101 = vector.shape_cast %100 : vector<1x8xf32> to vector<1x8x1xf32>
    %102 = arith.truncf %99 : vector<1x8x8xf32> to vector<1x8x8xbf16>
    "tpu.trace_start"() <{level = 10 : i32, message = "bqk,bke->bqe"}> : () -> ()
    %cst_26 = arith.constant dense<0.000000e+00> : vector<1x8x8xf32>
    %103 = tpu.matmul %102, %92, %cst_26 {dimension_numbers = #tpu.dot_dimension_numbers<[2], [1], [1], [2], [0, 0, 0, 1, 1, 2], [0], [0]>} : vector<1x8x8xbf16>, vector<1x8x8xbf16>, vector<1x8x8xf32> -> vector<1x8x8xf32>
    "tpu.trace_stop"() : () -> ()
    %104 = tpu.reciprocal %101 {approx = true} : vector<1x8x1xf32> -> vector<1x8x1xf32>
    %105 = vector.broadcast %104 : vector<1x8x1xf32> to vector<1x8x8xf32>
    %106 = arith.mulf %103, %105 : vector<1x8x8xf32>
    %107 = tpu.concatenate %37, %60, %83, %106 in 2 : vector<1x8x8xf32>, vector<1x8x8xf32>, vector<1x8x8xf32>, vector<1x8x8xf32> -> vector<1x8x32xf32>
    %108 = vector.shape_cast %107 : vector<1x8x32xf32> to vector<8x32xf32>
    %109 = arith.truncf %108 : vector<8x32xf32> to vector<8x32xbf16>
    %c0_27 = arith.constant 0 : index
    %c0_28 = arith.constant 0 : index
    %c0_29 = arith.constant 0 : index
    %110 = vector.load %arg5[%c0_27, %c0_28, %c0_29] : memref<1x32x32xbf16, #tpu.memory_space<vmem>>, vector<1x32x32xbf16>
    %111 = vector.shape_cast %110 : vector<1x32x32xbf16> to vector<32x32xbf16>
    %cst_30 = arith.constant dense<0.000000e+00> : vector<8x32xf32>
    %112 = tpu.matmul %109, %111, %cst_30 {dimension_numbers = #tpu.dot_dimension_numbers<[1], [0], [0], [1], [0, 0, 1, 1], [], []>} : vector<8x32xbf16>, vector<32x32xbf16>, vector<8x32xf32> -> vector<8x32xf32>
    %c0_31 = arith.constant 0 : index
    %c0_32 = arith.constant 0 : index
    %c0_33 = arith.constant 0 : index
    %113 = vector.load %arg6[%c0_31, %c0_32, %c0_33] : memref<1x1x32xf32, #tpu.memory_space<vmem>>, vector<1x1x32xf32>
    %114 = vector.shape_cast %113 : vector<1x1x32xf32> to vector<1x32xf32>
    %115 = vector.broadcast %114 : vector<1x32xf32> to vector<8x32xf32>
    %116 = arith.addf %112, %115 : vector<8x32xf32>
    %117 = arith.addf %4, %116 : vector<8x32xf32>
    %c0_34 = arith.constant 0 : index
    %c0_35 = arith.constant 0 : index
    %c0_36 = arith.constant 0 : index
    %118 = vector.load %arg7[%c0_34, %c0_35, %c0_36] : memref<1x1x32xf32, #tpu.memory_space<vmem>>, vector<1x1x32xf32>
    %119 = vector.shape_cast %118 : vector<1x1x32xf32> to vector<1x32xf32>
    %c0_37 = arith.constant 0 : index
    %c0_38 = arith.constant 0 : index
    %c0_39 = arith.constant 0 : index
    %120 = vector.load %arg8[%c0_37, %c0_38, %c0_39] : memref<1x1x32xf32, #tpu.memory_space<vmem>>, vector<1x1x32xf32>
    %121 = vector.shape_cast %120 : vector<1x1x32xf32> to vector<1x32xf32>
    %cst_40 = arith.constant dense<0.000000e+00> : vector<8xf32>
    %122 = vector.multi_reduction <add>, %117, %cst_40 [1] : vector<8x32xf32> to vector<8xf32>
    %123 = vector.shape_cast %122 : vector<8xf32> to vector<8x1xf32>
    %cst_41 = arith.constant 3.200000e+01 : f32
    %124 = vector.broadcast %cst_41 : f32 to vector<8x1xf32>
    %125 = arith.divf %123, %124 : vector<8x1xf32>
    %126 = vector.broadcast %125 : vector<8x1xf32> to vector<8x32xf32>
    %127 = arith.subf %117, %126 : vector<8x32xf32>
    %128 = arith.mulf %127, %127 : vector<8x32xf32>
    %cst_42 = arith.constant dense<0.000000e+00> : vector<8xf32>
    %129 = vector.multi_reduction <add>, %128, %cst_42 [1] : vector<8x32xf32> to vector<8xf32>
    %130 = vector.shape_cast %129 : vector<8xf32> to vector<8x1xf32>
    %cst_43 = arith.constant 3.200000e+01 : f32
    %131 = vector.broadcast %cst_43 : f32 to vector<8x1xf32>
    %132 = arith.divf %130, %131 : vector<8x1xf32>
    %133 = vector.broadcast %125 : vector<8x1xf32> to vector<8x32xf32>
    %134 = arith.subf %117, %133 : vector<8x32xf32>
    %cst_44 = arith.constant 9.99999974E-6 : f32
    %135 = vector.broadcast %cst_44 : f32 to vector<8x1xf32>
    %136 = arith.addf %132, %135 : vector<8x1xf32>
    %137 = math.rsqrt %136 : vector<8x1xf32>
    %138 = vector.broadcast %137 : vector<8x1xf32> to vector<8x32xf32>
    %139 = arith.mulf %134, %138 : vector<8x32xf32>
    %140 = vector.broadcast %119 : vector<1x32xf32> to vector<8x32xf32>
    %141 = arith.mulf %139, %140 : vector<8x32xf32>
    %142 = vector.broadcast %121 : vector<1x32xf32> to vector<8x32xf32>
    %143 = arith.addf %141, %142 : vector<8x32xf32>
    %144 = arith.truncf %143 : vector<8x32xf32> to vector<8x32xbf16>
    %c0_45 = arith.constant 0 : index
    %c0_46 = arith.constant 0 : index
    %c0_47 = arith.constant 0 : index
    %145 = vector.load %arg9[%c0_45, %c0_46, %c0_47] : memref<1x32x64xbf16, #tpu.memory_space<vmem>>, vector<1x32x64xbf16>
    %146 = vector.shape_cast %145 : vector<1x32x64xbf16> to vector<32x64xbf16>
    %cst_48 = arith.constant dense<0.000000e+00> : vector<8x64xf32>
    %147 = tpu.matmul %144, %146, %cst_48 {dimension_numbers = #tpu.dot_dimension_numbers<[1], [0], [0], [1], [0, 0, 1, 1], [], []>} : vector<8x32xbf16>, vector<32x64xbf16>, vector<8x64xf32> -> vector<8x64xf32>
    %c0_49 = arith.constant 0 : index
    %c0_50 = arith.constant 0 : index
    %c0_51 = arith.constant 0 : index
    %148 = vector.load %arg10[%c0_49, %c0_50, %c0_51] : memref<1x1x64xf32, #tpu.memory_space<vmem>>, vector<1x1x64xf32>
    %149 = vector.shape_cast %148 : vector<1x1x64xf32> to vector<1x64xf32>
    %150 = vector.broadcast %149 : vector<1x64xf32> to vector<8x64xf32>
    %151 = arith.addf %147, %150 : vector<8x64xf32>
    %cst_52 = arith.constant 0.000000e+00 : f32
    %152 = vector.broadcast %cst_52 : f32 to vector<8x64xf32>
    %153 = arith.maximumf %151, %152 : vector<8x64xf32>
    %154 = arith.truncf %153 : vector<8x64xf32> to vector<8x64xbf16>
    %c0_53 = arith.constant 0 : index
    %c0_54 = arith.constant 0 : index
    %c0_55 = arith.constant 0 : index
    %155 = vector.load %arg11[%c0_53, %c0_54, %c0_55] : memref<1x64x32xbf16, #tpu.memory_space<vmem>>, vector<1x64x32xbf16>
    %156 = vector.shape_cast %155 : vector<1x64x32xbf16> to vector<64x32xbf16>
    %cst_56 = arith.constant dense<0.000000e+00> : vector<8x32xf32>
    %157 = tpu.matmul %154, %156, %cst_56 {dimension_numbers = #tpu.dot_dimension_numbers<[1], [0], [0], [1], [0, 0, 1, 1], [], []>} : vector<8x64xbf16>, vector<64x32xbf16>, vector<8x32xf32> -> vector<8x32xf32>
    %c0_57 = arith.constant 0 : index
    %c0_58 = arith.constant 0 : index
    %c0_59 = arith.constant 0 : index
    %158 = vector.load %arg12[%c0_57, %c0_58, %c0_59] : memref<1x1x32xf32, #tpu.memory_space<vmem>>, vector<1x1x32xf32>
    %159 = vector.shape_cast %158 : vector<1x1x32xf32> to vector<1x32xf32>
    %160 = vector.broadcast %159 : vector<1x32xf32> to vector<8x32xf32>
    %161 = arith.addf %157, %160 : vector<8x32xf32>
    %162 = arith.addf %143, %161 : vector<8x32xf32>
    %c0_60 = arith.constant 0 : index
    %c0_61 = arith.constant 0 : index
    %c0_62 = arith.constant 0 : index
    %163 = vector.load %arg13[%c0_60, %c0_61, %c0_62] : memref<1x1x32xf32, #tpu.memory_space<vmem>>, vector<1x1x32xf32>
    %164 = vector.shape_cast %163 : vector<1x1x32xf32> to vector<1x32xf32>
    %c0_63 = arith.constant 0 : index
    %c0_64 = arith.constant 0 : index
    %c0_65 = arith.constant 0 : index
    %165 = vector.load %arg14[%c0_63, %c0_64, %c0_65] : memref<1x1x32xf32, #tpu.memory_space<vmem>>, vector<1x1x32xf32>
    %166 = vector.shape_cast %165 : vector<1x1x32xf32> to vector<1x32xf32>
    %cst_66 = arith.constant dense<0.000000e+00> : vector<8xf32>
    %167 = vector.multi_reduction <add>, %162, %cst_66 [1] : vector<8x32xf32> to vector<8xf32>
    %168 = vector.shape_cast %167 : vector<8xf32> to vector<8x1xf32>
    %cst_67 = arith.constant 3.200000e+01 : f32
    %169 = vector.broadcast %cst_67 : f32 to vector<8x1xf32>
    %170 = arith.divf %168, %169 : vector<8x1xf32>
    %171 = vector.broadcast %170 : vector<8x1xf32> to vector<8x32xf32>
    %172 = arith.subf %162, %171 : vector<8x32xf32>
    %173 = arith.mulf %172, %172 : vector<8x32xf32>
    %cst_68 = arith.constant dense<0.000000e+00> : vector<8xf32>
    %174 = vector.multi_reduction <add>, %173, %cst_68 [1] : vector<8x32xf32> to vector<8xf32>
    %175 = vector.shape_cast %174 : vector<8xf32> to vector<8x1xf32>
    %cst_69 = arith.constant 3.200000e+01 : f32
    %176 = vector.broadcast %cst_69 : f32 to vector<8x1xf32>
    %177 = arith.divf %175, %176 : vector<8x1xf32>
    %178 = vector.broadcast %170 : vector<8x1xf32> to vector<8x32xf32>
    %179 = arith.subf %162, %178 : vector<8x32xf32>
    %cst_70 = arith.constant 9.99999974E-6 : f32
    %180 = vector.broadcast %cst_70 : f32 to vector<8x1xf32>
    %181 = arith.addf %177, %180 : vector<8x1xf32>
    %182 = math.rsqrt %181 : vector<8x1xf32>
    %183 = vector.broadcast %182 : vector<8x1xf32> to vector<8x32xf32>
    %184 = arith.mulf %179, %183 : vector<8x32xf32>
    %185 = vector.broadcast %164 : vector<1x32xf32> to vector<8x32xf32>
    %186 = arith.mulf %184, %185 : vector<8x32xf32>
    %187 = vector.broadcast %166 : vector<1x32xf32> to vector<8x32xf32>
    %188 = arith.addf %186, %187 : vector<8x32xf32>
    %189 = vector.shape_cast %188 : vector<8x32xf32> to vector<1x8x32xf32>
    %c0_71 = arith.constant 0 : index
    %c0_72 = arith.constant 0 : index
    %c0_73 = arith.constant 0 : index
    %190 = vector.load %arg16[%c0_71, %c0_72, %c0_73] : memref<1x8x32xf32, #tpu.memory_space<vmem>>, vector<1x8x32xf32>
    tpu.vector_store %arg16[%c0_71, %c0_72, %c0_73], %189 {strides = array<i32>} : memref<1x8x32xf32, #tpu.memory_space<vmem>>, vector<1x8x32xf32>,
    %c1_i32 = arith.constant 1 : i32
    %191 = arith.cmpi eq, %arg1, %c1_i32 : i32
    %192 = arith.extui %191 : i1 to i32
    %c0_i32_74 = arith.constant 0 : i32
    %193 = arith.cmpi ne, %192, %c0_i32_74 : i32
    scf.if %193 {
      %194 = vector.extract_strided_slice %189 {offsets = [0, 7, 0], sizes = [1, 1, 32], strides = [1, 1, 1]} : vector<1x8x32xf32> to vector<1x1x32xf32>
      %c0_75 = arith.constant 0 : index
      %c0_76 = arith.constant 0 : index
      %c0_77 = arith.constant 0 : index
      %195 = vector.load %arg15[%c0_75, %c0_76, %c0_77] : memref<1x1x32xf32, #tpu.memory_space<vmem>>, vector<1x1x32xf32>
      tpu.vector_store %arg15[%c0_75, %c0_76, %c0_77], %194 {strides = array<i32>} : memref<1x1x32xf32, #tpu.memory_space<vmem>>, vector<1x1x32xf32>,
    } else {
    }
    return
  }
  func.func @transform_0(%arg0: i32, %arg1: i32) -> (i32, i32, i32) {
    %c0_i32 = arith.constant 0 : i32
    %c0_i32_0 = arith.constant 0 : i32
    %c0_i32_1 = arith.constant 0 : i32
    return %arg0, %c0_i32, %c0_i32_0 : i32, i32, i32
  }
  func.func @transform_1(%arg0: i32, %arg1: i32) -> (i32, i32, i32) {
    %c0_i32 = arith.constant 0 : i32
    %c0_i32_0 = arith.constant 0 : i32
    %c0_i32_1 = arith.constant 0 : i32
    return %arg1, %c0_i32, %c0_i32_0 : i32, i32, i32
  }
  func.func @transform_2(%arg0: i32, %arg1: i32) -> (i32, i32, i32) {
    %c0_i32 = arith.constant 0 : i32
    %c0_i32_0 = arith.constant 0 : i32
    %c0_i32_1 = arith.constant 0 : i32
    return %arg1, %c0_i32, %c0_i32_0 : i32, i32, i32
  }
  func.func @transform_3(%arg0: i32, %arg1: i32) -> (i32, i32, i32) {
    %c0_i32 = arith.constant 0 : i32
    %c0_i32_0 = arith.constant 0 : i32
    %c0_i32_1 = arith.constant 0 : i32
    return %arg1, %c0_i32, %c0_i32_0 : i32, i32, i32
  }
  func.func @transform_4(%arg0: i32, %arg1: i32) -> (i32, i32, i32) {
    %c0_i32 = arith.constant 0 : i32
    %c0_i32_0 = arith.constant 0 : i32
    %c0_i32_1 = arith.constant 0 : i32
    return %arg1, %c0_i32, %c0_i32_0 : i32, i32, i32
  }
  func.func @transform_5(%arg0: i32, %arg1: i32) -> (i32, i32, i32) {
    %c0_i32 = arith.constant 0 : i32
    %c0_i32_0 = arith.constant 0 : i32
    %c0_i32_1 = arith.constant 0 : i32
    return %arg1, %c0_i32, %c0_i32_0 : i32, i32, i32
  }
  func.func @transform_6(%arg0: i32, %arg1: i32) -> (i32, i32, i32) {
    %c0_i32 = arith.constant 0 : i32
    %c0_i32_0 = arith.constant 0 : i32
    %c0_i32_1 = arith.constant 0 : i32
    return %arg1, %c0_i32, %c0_i32_0 : i32, i32, i32
  }
  func.func @transform_7(%arg0: i32, %arg1: i32) -> (i32, i32, i32) {
    %c0_i32 = arith.constant 0 : i32
    %c0_i32_0 = arith.constant 0 : i32
    %c0_i32_1 = arith.constant 0 : i32
    return %arg1, %c0_i32, %c0_i32_0 : i32, i32, i32
  }
  func.func @transform_8(%arg0: i32, %arg1: i32) -> (i32, i32, i32) {
    %c0_i32 = arith.constant 0 : i32
    %c0_i32_0 = arith.constant 0 : i32
    %c0_i32_1 = arith.constant 0 : i32
    return %arg1, %c0_i32, %c0_i32_0 : i32, i32, i32
  }
  func.func @transform_9(%arg0: i32, %arg1: i32) -> (i32, i32, i32) {
    %c0_i32 = arith.constant 0 : i32
    %c0_i32_0 = arith.constant 0 : i32
    %c0_i32_1 = arith.constant 0 : i32
    return %arg1, %c0_i32, %c0_i32_0 : i32, i32, i32
  }
  func.func @transform_10(%arg0: i32, %arg1: i32) -> (i32, i32, i32) {
    %c0_i32 = arith.constant 0 : i32
    %c0_i32_0 = arith.constant 0 : i32
    %c0_i32_1 = arith.constant 0 : i32
    return %arg1, %c0_i32, %c0_i32_0 : i32, i32, i32
  }
  func.func @transform_11(%arg0: i32, %arg1: i32) -> (i32, i32, i32) {
    %c0_i32 = arith.constant 0 : i32
    %c0_i32_0 = arith.constant 0 : i32
    %c0_i32_1 = arith.constant 0 : i32
    return %arg1, %c0_i32, %c0_i32_0 : i32, i32, i32
  }
  func.func @transform_12(%arg0: i32, %arg1: i32) -> (i32, i32, i32) {
    %c0_i32 = arith.constant 0 : i32
    %c0_i32_0 = arith.constant 0 : i32
    %c0_i32_1 = arith.constant 0 : i32
    return %arg1, %c0_i32, %c0_i32_0 : i32, i32, i32
  }
  func.func @transform_13(%arg0: i32, %arg1: i32) -> (i32, i32, i32) {
    %c0_i32 = arith.constant 0 : i32
    %c0_i32_0 = arith.constant 0 : i32
    %c0_i32_1 = arith.constant 0 : i32
    return %arg0, %c0_i32, %c0_i32_0 : i32, i32, i32
  }
}

</mosaic_0001>

<bundles_post_ra>
// kernel: tpu_custom_call.1
= control target key start
LH: loop header
LB: loop body
LE: loop exit
PB: predicated region body
PF: predicated region fallthrough
CT: control target
= control target key end

     0   :  { %s2450_s0 = inlined_call_operand.hbm [shape: bf16[2,8,32], index: 0, kind: input, shape index: {}]   ;;  %s2451_s1 = inlined_call_operand.vmem [shape: bf16[2,32,96], index: 1, kind: input, shape index: {}]   ;;  %s2452_s2 = inlined_call_operand.hbm [shape: f32[2,1,96], index: 2, kind: input, shape index: {}]   ;;  %s2453_s3 = inlined_call_operand.vmem [shape: bf16[2,32,32], index: 3, kind: input, shape index: {}]   ;;  %s2454_s4 = inlined_call_operand.vmem [shape: f32[2,1,32], index: 4, kind: input, shape index: {}]   ;;  %s2455_s5 = inlined_call_operand.hbm [shape: f32[2,1,32], index: 5, kind: input, shape index: {}]   ;;  %s2456_s6 = inlined_call_operand.vmem [shape: f32[2,1,32], index: 6, kind: input, shape index: {}]   ;;  %s2457_s7 = inlined_call_operand.vmem [shape: bf16[2,32,64], index: 7, kind: input, shape index: {}]   ;;  %s2458_s8 = inlined_call_operand.vmem [shape: f32[2,1,64], index: 8, kind: input, shape index: {}]   ;;  %s2459_s9 = inlined_call_operand.vmem [shape: bf16[2,64,32], index: 9, kind: input, shape index: {}]   ;;  %s2460_s10 = inlined_call_operand.vmem [shape: f32[2,1,32], index: 10, kind: input, shape index: {}]   ;;  %s2461_s11 = inlined_call_operand.hbm [shape: f32[2,1,32], index: 11, kind: input, shape index: {}]   ;;  %s2462_s12 = inlined_call_operand.vmem [shape: f32[2,1,32], index: 12, kind: input, shape index: {}]   ;;  %s2463_s13 = inlined_call_operand.hbm [shape: f32[2,1,32], index: 13, kind: output, shape index: {}]  }
   0x1   :  { %2476 = sst [smem:[#allocation30_spill]] %s2450_s0 }
   0x2   :  { %2477 = sst [smem:[#allocation31_spill]] %s2451_s1 }
   0x3   :  { %2478 = sst [smem:[#allocation32_spill]] %s2452_s2 }
   0x4   :  { %2479 = sst [smem:[#allocation33_spill]] %s2453_s3 }
   0x5   :  { %2480 = sst [smem:[#allocation34_spill]] %s2455_s5 }
   0x6   :  { %2481 = sst [smem:[#allocation35_spill]] %s2456_s6 }
   0x7   :  { %2482 = sst [smem:[#allocation36_spill]] %s2457_s7 }
   0x8   :  { %2483 = sst [smem:[#allocation37_spill]] %s2458_s8 }
   0x9   :  { %2484 = sst [smem:[#allocation38_spill]] %s2459_s9 }
   0xa   :  { %2485 = sst [smem:[#allocation39_spill]] %s2460_s10 }
   0xb   :  { %2486 = sst [smem:[#allocation40_spill]] %s2461_s11 }
   0xc   :  { %2487 = sst [smem:[#allocation41_spill]] %s2462_s12 }
   0xd   :  { %2488 = sst [smem:[#allocation42_spill]] %s2463_s13 }
   0xe   :  { %18 = vsyncpa [#allocation5], 0 }
   0xf   :  { %20 = vsyncpa [#allocation5 + $0x1], 0 }
  0x10   :  { %21 = vsyncpa [#allocation8], 0 }
  0x11   :  { %23 = vsyncpa [#allocation8 + $0x1], 0 }
  0x12   :  { %24 = vsyncpa [#allocation11], 0 }
  0x13   :  { %26 = vsyncpa [#allocation11 + $0x1], 0 }
  0x14   :  { %27 = vsyncpa [#allocation6], 0 }
  0x15   :  { %29 = vsyncpa [#allocation6 + $0x1], 0  ;;  %s2056_s25 = smov 0   ;;  %s2058_s26 = smov 0  }
  0x16   :  { %s2060_s27 = smov 0   ;;  %s2062_s28 = smov 0  }
  0x17   :  { %s2064_s29 = smov 0   ;;  %s2066_s30 = smov 0  }
  0x18   :  { %s2068_s14 = smov 0   ;;  %s2070_s15 = smov 0  }
  0x19   :  { %s2072_s16 = smov 0   ;;  %s2074_s17 = smov 0  }
  0x1a   :  { %s2076_s18 = smov 0  }
  0x1b LB: > { %2489 = sst [smem:[#allocation17_spill]] %s1936_s27  ;;  %s2110_s19 = sadd.s32 4294967295, %s1968_s18   ;;  %s1968_s18 = sphi %s2076_s18, %s35_s18   ;;  %s1964_s17 = sphi %s2074_s17, %s2544_s17   ;;  %s1960_s16 = sphi %s2072_s16, %s2543_s16   ;;  %s1956_s15 = sphi %s2070_s15, %s2542_s15   ;;  %s1952_s14 = sphi %s2068_s14, %s2541_s14   ;;  %s1948_s30 = sphi %s2066_s30, %s2540_s30   ;;  %s1944_s29 = sphi %s2064_s29, %s2539_s29   ;;  %s1940_s28 = sphi %s2062_s28, %s2538_s28   ;;  %s1936_s27 = sphi %s2060_s27, %s2537_s27   ;;  %s1932_s26 = sphi %s2058_s26, %s2546_s26   ;;  %s1928_s25 = sphi %s2056_s25, %s2545_s25  }
  0x1c   : > { %2490 = sst [smem:[#allocation18_spill]] %s1940_s28  ;;  %s44_s20 = sadd.s32 1, %s1960_s16 }
  0x1d   : > { %2491 = sst [smem:[#allocation19_spill]] %s1944_s29  ;;  %p2113_p0 = scmp.ge.s32.totalorder %s44_s20, 2 }
  0x1e   : > { %2492 = sst [smem:[#allocation20_spill]] %s1948_s30  ;;  %p62_p1 = scmp.eq.s32.totalorder %s1968_s18, 0 }
  0x1f   : > { %2493 = sst [smem:[#allocation21_spill]] %s1956_s15  ;;  %p68_p2 = scmp.eq.s32.totalorder %s2110_s19, 0 }
  0x20   : > { %2494 = sst [smem:[#allocation22_spill]] %s1960_s16  ;;  %s106_s22 = sadd.s32 1, %s1936_s27 }
  0x21   : > { %2495 = sst [smem:[#allocation23_spill]] %s1964_s17  ;;  %s2548_s20 = smov (%p2113_p0, %s44_s20), 0 }
  0x22   : > { %2497 = sst [smem:[#allocation24_spill]] %s2548_s20  ;;  %p113_p3 = scmp.ne.s32.totalorder %s1936_s27, %s1932_s26 }
  0x23   : > { %p119_p4 = scmp.ne.s32.totalorder %s1932_s26, %s1928_s25  ;;  %s103_s23 = ssub.s32 %s1960_s16, %s2548_s20 }
  0x24   : > { %p104_p5 = scmp.eq.s32.totalorder %s103_s23, 0  ;;  %p115_p6 = por %p113_p3, %p62_p1 }
  0x25   : > { %p2133_p7 = por %p119_p4, %p68_p2  ;;  %p1582_p8 = scmp.lt.s32.totalorder %s1968_s18, 4 }
  0x26   : > { %s2139_s13 = scalar_select %p104_p5, %s1936_s27, %s106_s22  }
  0x27   : > { %s456_s15 = sand.u32 1, %s1968_s18   ;;  %s2143_s25 = sand.u32 1, %s1936_s27  }
  0x28   : > { %2499 = sst [smem:[#allocation25_spill]] %s2139_s13  ;;  %s459_s10 = scalar_lea.vmem [#allocation7], %s2143_s25 }
  0x29   : > { %s2500_s2 = sld [smem:[#allocation32_spill]]  ;;  %s466_s9 = sshll.u32 %s459_s10, 4  ;;  %s467_s9 = int_to_ptr.vmem [resolvable:$true] %s466_s9 }
  0x2a   : > { %p2152_p9 = pnand %p1582_p8, %p115_p6  ;;  %p1475_p10 = scmp.ge.s32.totalorder %s1968_s18, 1 }
  0x2b   : > { %p559_p11 = scmp.lt.s32.totalorder %s1968_s18, 5  ;;  %s2158_s12 = scalar_lea.sflag [#allocation8], %s456_s15 }
  0x2c   : > { %s1470_s20 = sadd.s32 4294967294, %s1968_s18   ;;  %p61_p13 = scmp.ne.s32.totalorder %s1948_s30, %s1944_s29 }
  0x2d   : > { %p2163_p12 = pnand %p1475_p10, %p559_p11  ;;  %p67_p4 = scmp.ne.s32.totalorder %s1944_s29, %s1940_s28 }
  0x2e   : > { %p2179_p5 = por %p62_p1, %p61_p13  ;;  %p403_p6 = scmp.eq.s32.totalorder %s2110_s19, 3 }
  0x2f   : > { %s462_s23 = scalar_lea.hbm %s2500_s2, %s1960_s16  ;;  %s54_s2 = sadd.s32 1, %s1948_s30 }
  0x30   : > { %s464_s22 = sshll.u32 %s462_s23, 4  ;;  %s47_s23 = sadd.s32 1, %s1964_s17  ;;  %s465_s22 = int_to_ptr.hbm [resolvable:$true] %s464_s22 }
  0x31   : > { %1571 = dma.hbm_to_vmem [thread:$0]  (!%p2152_p9), %s465_s22, 16, %s467_s9, %s2158_s12  }
  0x32   : > { %s2550_s23 = smov (!%p2113_p0, %s47_s23), %s1964_s17  ;;  %p2188_p10 = por %p68_p2, %p67_p4 }
  0x33   : > { %p49_p3 = scmp.ge.s32.totalorder %s2550_s23, 2  ;;  %p2192_p0 = por %p403_p6, %p61_p13 }
  0x34   : > { %p409_p1 = scmp.eq.s32.totalorder %s1470_s20, 3  ;;  %s429_s27 = sand.u32 1, %s1948_s30  }
  0x35   : > { %s2552_s23 = smov (%p49_p3, %s2550_s23), 0  ;;  %s1473_s7 = sshll.u32 %s429_s27, 2 }
  0x36   : > { %2504 = sst [smem:[#allocation26_spill]] %s2552_s23  ;;  %s51_s22 = ssub.s32 %s1964_s17, %s2552_s23 }
  0x37   : > { %s2506_s21 = scalar_select %p2192_p0, 1, 0 }
  0x38   : > { %p52_p11 = scmp.eq.s32.totalorder %s51_s22, 0  ;;  %p2199_p3 = por %p409_p1, %p67_p4 }
  0x39   : > { %2507 = sst [smem:[#allocation27_spill]] %s2506_s21  ;;  %s1474_s6 = sshll.u32 %s1964_s17, 2 }
  0x3a   : > { %s2508_s28 = scalar_select %p2199_p3, 1, 0 }
  0x3b   : > { %s2204_s8 = scalar_select %p52_p11, %s1948_s30, %s54_s2  }
  0x3c   : > { %2509 = sst [smem:[#allocation28_spill]] %s2508_s28  ;;  %s433_s20 = scalar_lea.vmem [#allocation4], %s1473_s7 }
  0x3d   : > { %2510 = sst [smem:[#allocation29_spill]] %s2204_s8  ;;  %s441_s22 = sshll.u32 %s433_s20, 4  ;;  %s442_s22 = int_to_ptr.vmem [resolvable:$true] %s441_s22 }
  0x3e   : > { %s2511_s0 = sld [smem:[#allocation30_spill]]  ;;  %p1566_p2 = pnand %p1582_p8, %p2179_p5 }
  0x3f   : > { %s2512_s5 = sld [smem:[#allocation34_spill]]  ;;  %s490_s1 = scalar_lea.vmem [#allocation9], %s2143_s25 }
  0x40   : > { %s497_s3 = sshll.u32 %s490_s1, 4  ;;  %s2513_s11 = sld [smem:[#allocation40_spill]]  ;;  %s498_s3 = int_to_ptr.vmem [resolvable:$true] %s497_s3 }
  0x41   : > { %s541_s20 = scalar_lea.vmem [#allocation10], %s2143_s25  ;;  %s539_s8 = scalar_lea.sflag [#allocation11], %s2143_s25 }
  0x44   : > { %s437_s21 = scalar_lea.hbm %s2511_s0, %s1474_s6  ;;  %s430_s6 = scalar_lea.sflag [#allocation5], %s429_s27 }
  0x45   : > { %s439_s23 = sshll.u32 %s437_s21, 4  ;;  %s493_s17 = scalar_lea.hbm %s2512_s5, %s1960_s16  ;;  %s440_s23 = int_to_ptr.hbm [resolvable:$true] %s439_s23 }
  0x46   : > { %s495_s30 = sshll.u32 %s493_s17, 4  ;;  %s544_s15 = scalar_lea.hbm %s2513_s11, %s1960_s16  ;;  %s496_s30 = int_to_ptr.hbm [resolvable:$true] %s495_s30 }
  0x47   : > { %1568 = dma.hbm_to_vmem [thread:$0]  (!%p1566_p2), %s440_s23, 64, %s442_s22, %s430_s6  }
  0x48   : > { %1574 = dma.hbm_to_vmem [thread:$0]  (!%p2152_p9), %s496_s30, 16, %s498_s3, %s2158_s12  }
  0x49   : > { %s548_s0 = sshll.u32 %s541_s20, 4  ;;  %s546_s28 = sshll.u32 %s544_s15, 4  ;;  %s549_s0 = int_to_ptr.vmem [resolvable:$true] %s548_s0  ;;  %s547_s28 = int_to_ptr.hbm [resolvable:$true] %s546_s28 }
  0x4a   : > { %1577 = dma.hbm_to_vmem [thread:$0]  (!%p2152_p9), %s547_s28, 16, %s549_s0, %s539_s8  }
  0x4b   : > { %563 = sbr.rel (%p2163_p12) target bundleno = 1876 (0x754), region = 72  ;;  %s2233_s27 = sand.u32 (!%p2163_p12), 1, %s1944_s29  }
  0x4c   : > { %s1476_s30 = sshll.u32 (!%p2163_p12), %s2233_s27, 2  ;;  %s566_s17 = scalar_lea.sflag (!%p2163_p12), [#allocation5], %s2233_s27 }
  0x4d   : > { %s569_s12 = scalar_lea.vmem (!%p2163_p12), [#allocation4], %s1476_s30 }
  0x50   : > { %1911 = dma.done.wait (%p2188_p10), %s566_s17, 64  }
  0x51   : > { %1913 = vsyncadd (%p2188_p10), %s566_s17, 4294967232  ;;  %s575_s0 = sand.u32 1, %s2110_s19   ;;  %s2243_s13 = sand.u32 1, %s1932_s26  }
  0x52   : > { %s576_s28 = scalar_lea.sflag [#allocation8], %s575_s0 }
  0x53   : > { %1915 = dma.done.wait (%p2133_p7), %s576_s28, 32  }
  0x54   : > { %1917 = vsyncadd (%p2133_p7), %s576_s28, 4294967264  ;;  %s594_s23 = scalar_lea.sflag [#allocation11], %s2243_s13 }
  0x55   : > { %1919 = dma.done.wait (%p2133_p7), %s594_s23, 16  }
  0x56   : > { %1921 = vsyncadd (%p2133_p7), %s594_s23, 4294967280  ;;  %p686_p8 = scmp.lt.s32.totalorder %s1952_s14, 1  ;;  %s2514_s7 = sld [smem:[#allocation31_spill]] }
  0x57   : > { %s2515_s8 = sld [smem:[#allocation33_spill]]  ;;  %p1485_p7 = scmp.ne.s32.totalorder %s1952_s14, 0 }
  0x58   : > { %s2259_s19 = scalar_select %p686_p8, %s1952_s14, 1 }
  0x59   : > { %s2517_s25 = sld [smem:[#allocation36_spill]] }
  0x5a   : > { %s1541_s22 = sshll.u32 %s2259_s19, 4  ;;  %s2518_s3 = sld [smem:[#allocation37_spill]] }
  0x5b   : > { %s1544_s24 = sshll.u32 %s2259_s19, 5  ;;  %s2519_s16 = sld [smem:[#allocation38_spill]] }
  0x5c   : > { %s690_s21 = scalar_lea.vmem %s2514_s7, %s1541_s22  ;;  %s2520_s29 = sld [smem:[#allocation39_spill]] }
  0x5d   : > { %s2272_s30 = scalar_lea.vmem %s2515_s8, %s1541_s22  ;;  %s2521_s23 = sld [smem:[#allocation41_spill]] }
  0x5f   : > { %s2281_s5 = scalar_lea.vmem %s2517_s25, %s1541_s22  ;;  %s685_s25 = scalar_lea.vmem [#allocation12], %s2233_s27 }
  0x60   : > { %s709_s11 = scalar_lea.vmem %s2518_s3, %s2259_s19  ;;  %725 = sbr.rel (%p1485_p7) target bundleno = 108 (0x6c), region = 92 }
  0x61   : > { %s2291_s15 = scalar_lea.vmem %s2519_s16, %s1544_s24 }
  0x62   : > { %s717_s17 = scalar_lea.vmem %s2520_s29, %s2259_s19 }
  0x63   : > { %s720_s10 = scalar_lea.vmem %s2521_s23, %s2259_s19 }
  0x65   : > { %v726_v0 = vld [vmem:[%s569_s12] sm:$0xf]  ;;  %vm728_vm0 = vcmask 261120   ;;  %v730_v1 = vlaneseq  ;;  %vm736_vm1 = vcmask 64512   ;;  %v1970_v5 = vmov 0.0  }
  0x66   : > { %v727_v2 = vunpack.c.l.bf16 %v726_v0 }
  0x67   : > { %v731_v3 = vshrl.u32 %v730_v1, 7  ;;  %v733_v4 = vand.u32 127, %v730_v1 }
  0x68   : > { %729 = vst.msk [vmem:[#allocation2] sm:$0xff] %vm728_vm0, %v727_v2 }
  0x69   : > { %vm734_vm2 = vcmp.gt.s32.totalorder %v733_v4, %v731_v3 }
  0x6a   : > { %v735_v6 = vsel %vm734_vm2, -1e+30, %v1970_v5 }
  0x6b   : > { %737 = vst.msk [vmem:[#allocation3] sm:$0xff] %vm736_vm1, %v735_v6 }
  0x6c PF: > { %v1546_v7 = vld [vmem:[%s690_s21 + $0x8] sm:$0xff]  ;;  %v1545_v8 = vld [vmem:[%s690_s21] sm:$0xff]  ;;  %vm760_vm3 = vcmask 261120   ;;  %s2522_s29 = scalar_lea.vmem [#allocation7], %s2243_s13  ;;  %s1971_s16 = smov 104   ;;  %vm784_vm4 = vcmask 64512  }
  0x6d   : > { %770 = vmatpush.bf16.msra.mxu0 %v1546_v7  ;;  %v1688_v11 = vld [vmem:[%s2522_s29] ss:$0 sm:$0xff]  ;;  %s1972_s12 = smov 120   ;;  %s1973_s9 = smov 96   ;;  %vm819_vm5 = vcmask 1043456   ;;  %vm1019_vm6 = vcmask 130048  }
  0x6e   : > { %s1974_s22 = smov 80   ;;  %s1975_s3 = smov 72   ;;  %vm1021_vm7 = vcmask 195584   ;;  %vm1175_vm12 = vcmask 523264  }
  0x6f   : > { %v2303_v9 = vld [vmem:[#allocation2] sm:$0xff]  ;;  %s1976_s21 = smov 88   ;;  %s1977_s23 = smov 64  }
  0x70   : > { %v739_v10 = vpack.c.bf16 %v2303_v9, %v2303_v9  ;;  %s1978_s2 = smov 112   ;;  %s1979_s1 = smov 56  }
  0x71   : > { %771 = vmatpush.bf16.msra.mxu0 %v1545_v8  ;;  %s1980_s24 = smov 48   ;;  %s1981_s6 = smov 40  }
  0x72   : > { %v777_v33 = vld [vmem:[#allocation3] sm:$0xff]  ;;  %s1982_s7 = smov 8   ;;  %s1983_s20 = smov 16  }
  0x73   : > { %s1984_s8 = smov 24   ;;  %s2523_s28 = scalar_lea.vmem %s2454_s4, %s2259_s19 }
  0x74   : > { %1494 = vmatmul.msk.bf16.vlgmr.msra.gmra.mxu0 %vm760_vm3, %v739_v10  ;;  %p1538_p9 = scmp.ne.s32.totalorder %s1952_s14, 1 }
  0xf1   : > { %v773_v12 = vpop.f32.mrf.mxu0 }
  0xf2   : > { %v774_v13 = vadd.f32 %v1688_v11, %v773_v12 }
  0xf4   : > { %v778_v14 = vpack.c.bf16 %v774_v13, %v774_v13 }
  0xf6   : > { %v780_v15 = vunpack.c.l.b16 %v778_v14 }
  0xf8   : > { %v2310_v16 = vpack.c.b16 %v780_v15, %v780_v15 }
  0xf9   : > { %v775_v17 = vpop.f32.mrf.mxu0 }
  0xfa   : > { %950 = vrot.lane.b32.xlu2 %v2310_v16, %s1971_s16  ;;  %838 = vrot.lane.b32.xlu1 %v2310_v16, %s1972_s12  ;;  %s2525_s12 = sld [smem:[#allocation35_spill]] }
  0xfb   : > { %782 = vrot.lane.b32.xlu0 %v2310_v16, %s1973_s9 }
 0x100   : > { %s2526_s9 = scalar_lea.vmem %s2525_s12, %s2259_s19 }
 0x102   : > { %896 = vrot.lane.b32.xlu2 %v2310_v16, %s1974_s22  ;;  %952 = vrot.lane.b32.xlu1 %v2310_v16, %s1975_s3 }
 0x103   : > { %840 = vrot.lane.b32.xlu0 %v2310_v16, %s1976_s21 }
 0x10a   : > { %814 = vrot.lane.b32.xlu2 %v2310_v16, %s1977_s23 }
 0x10b   : > { %894 = vrot.lane.b32.xlu0 %v2310_v16, %s1978_s2 }
 0x112   : > { %871 = vrot.lane.b32.xlu2 %v2310_v16, %s1979_s1 }
 0x154   : > { %v951_v18 = vpop.permute.xlu2 %950 }
 0x15c   : > { %v897_v19 = vpop.permute.xlu2 %896 }
 0x15d   : > { %v902_v20 = vsel %vm784_vm4, %v897_v19, 0 }
 0x15e   : > { %911 = vmatpush.bf16.xpose.msrb.mxu0 %v902_v20 }
 0x164   : > { %v815_v21 = vpop.permute.xlu2 %814 }
 0x165   : > { %v821_v22 = vsel %vm819_vm5, %v815_v21, 0 }
 0x166   : > { %830 = vmatpush.bf16.msra.mxu2 %v821_v22 }
 0x16c   : > { %v872_v23 = vpop.permute.xlu2 %871  ;;  %v839_v24 = vpop.permute.xlu1 %838 }
 0x16d   : > { %v783_v25 = vpop.permute.xlu0 %782  ;;  %v877_v26 = vsel %vm819_vm5, %v872_v23, 0 }
 0x16e   : > { %v789_v27 = vsel %vm784_vm4, %v783_v25, 0  ;;  %886 = vmatpush.bf16.msrb.mxu2 %v877_v26 }
 0x16f   : > { %798 = vmatpush.bf16.xpose.msra.mxu1 %v789_v27 }
 0x174   : > { %v953_v28 = vpop.permute.xlu1 %952 }
 0x175   : > { %v841_v29 = vpop.permute.xlu0 %840  ;;  %v958_v30 = vsel %vm784_vm4, %v953_v28, 0 }
 0x176   : > { %1495 = vmatmul.msk.bf16.vlgmr.msra.gmra.mxu1 %vm784_vm4, %v778_v14  ;;  %v846_v31 = vsel %vm784_vm4, %v841_v29, 0 }
 0x177   : > { %855 = vmatpush.bf16.xpose.msra.mxu3 %v846_v31 }
 0x17d   : > { %v895_v32 = vpop.permute.xlu0 %894 }
 0x17e   : > { %1497 = vmatmul.msk.bf16.vlgmr.msra.gmra.mxu3 %vm784_vm4, %v839_v24  ;;  %1499 = vmatmul.msk.bf16.vlgmr.msrb.gmra.mxu0 %vm784_vm4, %v895_v32  ;;  %v1548_v32 = vld [vmem:[%s2272_s30 + $0x8] sm:$0xff] }
 0x17f   : > { %967 = vmatpush.bf16.xpose.msrb.mxu3 %v958_v30  ;;  %1053 = vmatpush.bf16.msra.mxu0 %v1548_v32 }
 0x18e   : > { %1501 = vmatmul.msk.bf16.vlgmr.msrb.gmra.mxu3 %vm784_vm4, %v951_v18 }
 0x1f3   : > { %v800_v34 = vpop.f32.mrf.mxu1 }
 0x1f4   : > { %v801_v35 = vadd.f32 %v800_v34, %v777_v33 }
 0x1f6   : > { %v804_v36 = vsel %vm784_vm4, %v801_v35, -inf }
 0x1f7   : > { %805 = vmax.xlane.f32.xlu1 %v804_v36 }
 0x1fb   : > { %v802_v37 = vpop.f32.mrf.mxu1  ;;  %v913_v38 = vpop.f32.mrf.mxu0 }
 0x1fc   : > { %v914_v39 = vadd.f32 %v913_v38, %v777_v33 }
 0x1fe   : > { %v917_v40 = vsel %vm784_vm4, %v914_v39, -inf }
 0x1ff   : > { %918 = vmax.xlane.f32.xlu1 %v917_v40 }
 0x201   : > { %v857_v41 = vpop.f32.mrf.mxu3 }
 0x202   : > { %v858_v42 = vadd.f32 %v857_v41, %v777_v33 }
 0x203   : > { %v915_v43 = vpop.f32.mrf.mxu0 }
 0x204   : > { %v861_v44 = vsel %vm784_vm4, %v858_v42, -inf }
 0x205   : > { %862 = vmax.xlane.f32.xlu0 %v861_v44  ;;  %v1689_v44 = vld [vmem:[%s2523_s28] ss:$0 sm:$0xff] }
 0x209   : > { %v859_v45 = vpop.f32.mrf.mxu3 }
 0x211   : > { %v969_v46 = vpop.f32.mrf.mxu3 }
 0x212   : > { %v970_v47 = vadd.f32 %v969_v46, %v777_v33  ;;  %v1547_v33 = vld [vmem:[%s2272_s30] sm:$0xff] }
 0x213   : > { %1054 = vmatpush.bf16.msra.mxu0 %v1547_v33 }
 0x214   : > { %v973_v48 = vsel %vm784_vm4, %v970_v47, -inf }
 0x215   : > { %974 = vmax.xlane.f32.xlu2 %v973_v48 }
 0x218   : > { %927 = vrot.lane.b32.xlu1 %v2310_v16, %s1980_s24 }
 0x219   : > { %v971_v49 = vpop.f32.mrf.mxu3  ;;  %983 = vrot.lane.b32.xlu0 %v2310_v16, %s1981_s6 }
 0x26a   : > { %v806_v50 = vpop.xlane.xlu1 %805 }
 0x26b   : > { %v807_v51 = vsub.f32 %v801_v35, %v806_v50  ;;  %v1985_v50 = vmov 32.0  }
 0x26d   : > { %v808_v52 = vmul.f32 1.442695, %v807_v51 }
 0x26f   : > { %1696 = vpow2.f32 %v808_v52 }
 0x272   : > { %v919_v55 = vpop.xlane.xlu1 %918 }
 0x273   : > { %v920_v58 = vsub.f32 %v914_v39, %v919_v55 }
 0x275   : > { %v1697_v53 = vpop.eup %1696  ;;  %v921_v60 = vmul.f32 1.442695, %v920_v58 }
 0x276   : > { %v813_v54 = vpack.c.bf16 %v1697_v53, %v1697_v53  ;;  %v810_v13 = vsel %vm784_vm4, %v1697_v53, 0.0 }
 0x278   : > { %1496 = vmatmul.msk.bf16.vlgmr.msra.gmra.mxu2 %vm784_vm4, %v813_v54  ;;  %v863_v56 = vpop.xlane.xlu0 %862 }
 0x279   : > { %v864_v57 = vsub.f32 %v858_v42, %v863_v56 }
 0x27b   : > { %v865_v59 = vmul.f32 1.442695, %v864_v57 }
 0x27d   : > { %1698 = vpow2.f32 %v865_v59 }
 0x27e   : > { %1700 = vpow2.f32 %v921_v60 }
 0x283   : > { %v1699_v61 = vpop.eup %1698 }
 0x284   : > { %v867_v62 = vsel %vm784_vm4, %v1699_v61, 0.0  ;;  %v870_v63 = vpack.c.bf16 %v1699_v61, %v1699_v61  ;;  %v1701_v1 = vpop.eup %1700  ;;  %v1550_v61 = vld [vmem:[%s2281_s5 + $0x8] sm:$0xff] }
 0x285   : > { %868 = vadd.xlane.f32.xlu2 %v867_v62  ;;  %v923_v8 = vsel %vm784_vm4, %v1701_v1, 0.0  ;;  %v926_v10 = vpack.c.bf16 %v1701_v1, %v1701_v1  ;;  %v1549_v62 = vld [vmem:[%s2281_s5] sm:$0xff]  ;;  %s2524_s5 = scalar_lea.vmem [#allocation9], %s2243_s13 }
 0x288   : > { %v975_v0 = vpop.xlane.xlu2 %974  ;;  %1498 = vmatmul.msk.bf16.vlgmr.msrb.gmra.mxu2 %vm784_vm4, %v870_v63  ;;  %v1554_v63 = vld [vmem:[%s2291_s15 + $0x18] sm:$0xff] }
 0x289   : > { %v976_v2 = vsub.f32 %v970_v47, %v975_v0  ;;  %1183 = vmatpush.bf16.msra.mxu3 %v1554_v63 }
 0x28a   : > { %v928_v3 = vpop.permute.xlu1 %927 }
 0x28b   : > { %v977_v4 = vmul.f32 1.442695, %v976_v2  ;;  %v984_v5 = vpop.permute.xlu0 %983  ;;  %v933_v6 = vsel %vm819_vm5, %v928_v3, 0  ;;  %v1553_v2 = vld [vmem:[%s2291_s15 + $0x10] sm:$0xff] }
 0x28c   : > { %v989_v7 = vsel %vm819_vm5, %v984_v5, 0  ;;  %942 = vmatpush.bf16.msrb.mxu1 %v933_v6 }
 0x28d   : > { %1702 = vpow2.f32 %v977_v4  ;;  %924 = vadd.xlane.f32.xlu2 %v923_v8  ;;  %998 = vmatpush.bf16.msra.mxu2 %v989_v7 }
 0x28e   : > { %1184 = vmatpush.bf16.msra.mxu3 %v1553_v2 }
 0x28f   : > { %1500 = vmatmul.msk.bf16.vlgmr.msrb.gmra.mxu1 %vm784_vm4, %v926_v10 }
 0x290   : > { %1130 = vmatpush.bf16.msra.mxu1 %v1550_v61 }
 0x293   : > { %v1703_v11 = vpop.eup %1702 }
 0x294   : > { %v979_v12 = vsel %vm784_vm4, %v1703_v11, 0.0  ;;  %v982_v14 = vpack.c.bf16 %v1703_v11, %v1703_v11  ;;  %1131 = vmatpush.bf16.msra.mxu1 %v1549_v62  ;;  %v1690_v11 = vld [vmem:[%s2524_s5] ss:$0 sm:$0xff] }
 0x295   : > { %980 = vadd.xlane.f32.xlu0 %v979_v12  ;;  %811 = vadd.xlane.f32.xlu2 %v810_v13  ;;  %v1691_v13 = vld [vmem:[%s2526_s9] ss:$0 sm:$0xff] }
 0x298   : > { %1502 = vmatmul.msk.bf16.vlgmr.msra.gmra.mxu2 %vm784_vm4, %v982_v14 }
 0x2f8   : > { %v869_v15 = vpop.xlane.xlu2 %868 }
 0x2f9   : > { %1704 = vrcp.f32 %v869_v15 }
 0x2fb   : > { %v832_v16 = vpop.f32.mrf.mxu2 }
 0x2ff   : > { %v1705_v19 = vpop.eup %1704 }
 0x300   : > { %v925_v17 = vpop.xlane.xlu2 %924 }
 0x301   : > { %1706 = vrcp.f32 %v925_v17 }
 0x303   : > { %v834_v18 = vpop.f32.mrf.mxu2 }
 0x304   : > { %v1552_v18 = vld [vmem:[%s2291_s15 + $0x8] sm:$0xff] }
 0x305   : > { %1185 = vmatpush.bf16.msra.mxu3 %v1552_v18 }
 0x307   : > { %v1707_v21 = vpop.eup %1706 }
 0x308   : > { %v981_v25 = vpop.xlane.xlu0 %980  ;;  %v812_v34 = vpop.xlane.xlu2 %811 }
 0x309   : > { %1708 = vrcp.f32 %v981_v25 }
 0x30a   : > { %1710 = vrcp.f32 %v812_v34 }
 0x30b   : > { %v888_v20 = vpop.f32.mrf.mxu2  ;;  %1712 = vrcp.f32 %v1985_v50 }
 0x30c   : > { %v893_v22 = vmul.f32 %v1705_v19, %v888_v20  ;;  %v944_v23 = vpop.f32.mrf.mxu1  ;;  %v1551_v19 = vld [vmem:[%s2291_s15] sm:$0xff] }
 0x30d   : > { %v949_v24 = vmul.f32 %v1707_v21, %v944_v23  ;;  %1186 = vmatpush.bf16.msra.mxu3 %v1551_v19  ;;  %v1692_v20 = vld [vmem:[%s709_s11] ss:$0 sm:$0xff]  ;;  %s2529_s11 = scalar_lea.vmem [#allocation10], %s2243_s13 }
 0x30e   : > { %1007 = vrot.lane.b32.xlu1 %v893_v22, %s1982_s7 }
 0x30f   : > { %1011 = vrot.lane.b32.xlu2 %v949_v24, %s1983_s20  ;;  %v1709_v28 = vpop.eup %1708 }
 0x310   : > { %v1711_v35 = vpop.eup %1710 }
 0x311   : > { %v837_v37 = vmul.f32 %v1711_v35, %v832_v16  ;;  %v1713_v51 = vpop.eup %1712 }
 0x312   : > { %v1067_v52 = vmul.f32 32.0, %v1713_v51  ;;  %vm1071_vm8 = vweird.f32 %v1713_v51 }
 0x313   : > { %v890_v26 = vpop.f32.mrf.mxu2 }
 0x314   : > { %v946_v27 = vpop.f32.mrf.mxu1  ;;  %v1068_v53 = vsub.f32 1.0, %v1067_v52  ;;  %v1693_v26 = vld [vmem:[%s717_s17] ss:$0 sm:$0xff] }
 0x316   : > { %v1069_v54 = vmul.f32 %v1713_v51, %v1068_v53 }
 0x318   : > { %v1070_v55 = vadd.f32 %v1713_v51, %v1069_v54 }
 0x31a   : > { %v1072_v56 = vsel %vm1071_vm8, %v1713_v51, %v1070_v55 }
 0x31b   : > { %v1000_v29 = vpop.f32.mrf.mxu2 }
 0x31c   : > { %v1005_v30 = vmul.f32 %v1709_v28, %v1000_v29 }
 0x31e   : > { %1015 = vrot.lane.b32.xlu1 %v1005_v30, %s1984_s8 }
 0x323   : > { %v1002_v31 = vpop.f32.mrf.mxu2 }
 0x369   : > { %v1012_v39 = vpop.permute.xlu2 %1011 }
 0x380   : > { %v1008_v36 = vpop.permute.xlu1 %1007 }
 0x381   : > { %v1018_v38 = vsel %vm784_vm4, %v837_v37, %v1008_v36 }
 0x382   : > { %v1020_v40 = vsel %vm1019_vm6, %v1018_v38, %v1012_v39 }
 0x390   : > { %v1016_v41 = vpop.permute.xlu1 %1015 }
 0x391   : > { %v1022_v42 = vsel %vm1021_vm7, %v1020_v40, %v1016_v41 }
 0x392   : > { %v1023_v43 = vpack.c.bf16 %v1022_v42, %v1022_v42 }
 0x394   : > { %1511 = vmatmul.msk.bf16.vlgmr.msra.gmra.mxu0 %vm760_vm3, %v1023_v43 }
 0x411   : > { %v1056_v45 = vpop.f32.mrf.mxu0 }
 0x412   : > { %v1057_v46 = vadd.f32 %v1689_v44, %v1056_v45 }
 0x414   : > { %v1060_v47 = vadd.f32 %v1057_v46, %v2303_v9  ;;  %v1694_v46 = vld [vmem:[%s2529_s11] ss:$0 sm:$0xff] }
 0x416   : > { %v1063_v48 = vsel %vm760_vm3, %v1060_v47, 0.0 }
 0x417   : > { %1064 = vadd.xlane.f32.xlu1 %v1063_v48  ;;  %v1695_v48 = vld [vmem:[%s720_s10] ss:$0 sm:$0xff] }
 0x419   : > { %v1058_v49 = vpop.f32.mrf.mxu0 }
 0x48a   : > { %v1065_v57 = vpop.xlane.xlu1 %1064 }
 0x48b   : > { %v1073_v58 = vmul.f32 %v1072_v56, %v1065_v57 }
 0x48d   : > { %v1074_v9 = vsub.f32 %v1060_v47, %v1073_v58 }
 0x48f   : > { %v1075_v59 = vmul.f32 %v1074_v9, %v1074_v9 }
 0x491   : > { %v1076_v60 = vsel %vm760_vm3, %v1075_v59, 0.0 }
 0x492   : > { %1077 = vadd.xlane.f32.xlu2 %v1076_v60 }
 0x505   : > { %v1078_v0 = vpop.xlane.xlu2 %1077 }
 0x506   : > { %v1079_v1 = vmul.f32 %v1078_v0, %v1072_v56 }
 0x508   : > { %v1080_v3 = vadd.f32 1e-05, %v1079_v1 }
 0x50a   : > { %1714 = vrsqrt.f32 %v1080_v3  ;;  %vm1087_vm10 = vweird.f32 %v1080_v3 }
 0x510   : > { %v1715_v4 = vpop.eup %1714 }
 0x511   : > { %v1082_v5 = vmul.f32 %v1715_v4, %v1080_v3  ;;  %vm1088_vm9 = vweird.f32 %v1715_v4 }
 0x512   : > { %vm1089_vm11 = vmor %vm1087_vm10, %vm1088_vm9 }
 0x513   : > { %v1083_v6 = vmul.f32 %v1715_v4, %v1082_v5 }
 0x515   : > { %v1084_v7 = vmul.f32 0.5, %v1083_v6 }
 0x517   : > { %v1085_v8 = vsub.f32 1.5, %v1084_v7 }
 0x519   : > { %v1086_v10 = vmul.f32 %v1715_v4, %v1085_v8 }
 0x51b   : > { %v1090_v12 = vsel %vm1089_vm11, %v1715_v4, %v1086_v10 }
 0x51c   : > { %v1091_v14 = vmul.f32 %v1090_v12, %v1074_v9 }
 0x51e   : > { %v1095_v15 = vmul.f32 %v1690_v11, %v1091_v14 }
 0x520   : > { %v1099_v16 = vadd.f32 %v1691_v13, %v1095_v15 }
 0x522   : > { %v1100_v17 = vpack.c.bf16 %v1099_v16, %v1099_v16 }
 0x524   : > { %1520 = vmatmul.msk.bf16.vlgmr.msra.gmra.mxu1 %vm760_vm3, %v1100_v17 }
 0x5a1   : > { %v1133_v21 = vpop.f32.mrf.mxu1 }
 0x5a2   : > { %v1134_v22 = vadd.f32 %v1692_v20, %v1133_v21 }
 0x5a4   : > { %v1137_v23 = vmax.f32 %v1134_v22, 0.0 }
 0x5a6   : > { %v1138_v24 = vpack.c.bf16 %v1137_v23, %v1137_v23 }
 0x5a8   : > { %1537 = vmatmul.msk.bf16.vlgmr.msra.gmra.mxu3 %vm1175_vm12, %v1138_v24 }
 0x5a9   : > { %v1135_v25 = vpop.f32.mrf.mxu1 }
 0x62b   : > { %v1188_v27 = vpop.f32.mrf.mxu3 }
 0x62c   : > { %v1189_v28 = vadd.f32 %v1693_v26, %v1188_v27 }
 0x62e   : > { %v1192_v29 = vadd.f32 %v1189_v28, %v1099_v16 }
 0x630   : > { %v1195_v30 = vsel %vm760_vm3, %v1192_v29, 0.0 }
 0x631   : > { %1196 = vadd.xlane.f32.xlu0 %v1195_v30 }
 0x633   : > { %v1190_v31 = vpop.f32.mrf.mxu3 }
 0x6a4   : > { %v1197_v32 = vpop.xlane.xlu0 %1196 }
 0x6a5   : > { %v1198_v33 = vmul.f32 %v1197_v32, %v1072_v56 }
 0x6a7   : > { %v1199_v34 = vsub.f32 %v1192_v29, %v1198_v33 }
 0x6a9   : > { %v1200_v35 = vmul.f32 %v1199_v34, %v1199_v34 }
 0x6ab   : > { %v1201_v36 = vsel %vm760_vm3, %v1200_v35, 0.0 }
 0x6ac   : > { %1202 = vadd.xlane.f32.xlu0 %v1201_v36 }
 0x71f   : > { %v1203_v37 = vpop.xlane.xlu0 %1202 }
 0x720   : > { %v1204_v38 = vmul.f32 %v1203_v37, %v1072_v56 }
 0x722   : > { %v1205_v39 = vadd.f32 1e-05, %v1204_v38 }
 0x724   : > { %1716 = vrsqrt.f32 %v1205_v39  ;;  %vm1212_vm14 = vweird.f32 %v1205_v39 }
 0x72a   : > { %v1717_v40 = vpop.eup %1716 }
 0x72b   : > { %v1207_v41 = vmul.f32 %v1717_v40, %v1205_v39  ;;  %vm1213_vm13 = vweird.f32 %v1717_v40 }
 0x72c   : > { %vm1214_vm15 = vmor %vm1212_vm14, %vm1213_vm13 }
 0x72d   : > { %v1208_v42 = vmul.f32 %v1717_v40, %v1207_v41 }
 0x72f   : > { %v1209_v43 = vmul.f32 0.5, %v1208_v42 }
 0x731   : > { %v1210_v44 = vsub.f32 1.5, %v1209_v43 }
 0x733   : > { %v1211_v45 = vmul.f32 %v1717_v40, %v1210_v44 }
 0x735   : > { %v1215_v47 = vsel %vm1214_vm15, %v1717_v40, %v1211_v45 }
 0x736   : > { %v1216_v49 = vmul.f32 %v1215_v47, %v1199_v34 }
 0x738   : > { %v1220_v50 = vmul.f32 %v1694_v46, %v1216_v49  ;;  %1229 = sbr.rel (%p1538_p9) target bundleno = 1855 (0x73f), region = 96 }
 0x73a   : > { %v1224_v51 = vadd.f32 %v1695_v48, %v1220_v50 }
 0x73c   : > { %1225 = vst.msk [vmem:[#allocation2] sm:$0xff] %vm760_vm3, %v1224_v51 }
 0x73d   : > { %vm1230_vm0 = vcmask 261127  }
 0x73e   : > { %1231 = vst.msk [vmem:[%s685_s25 - $0x7] sm:$0x80] %vm1230_vm0, %v1224_v51 }
 0x73f PF: > { %s2531_s13 = sld [smem:[#allocation21_spill]]  ;;  %s1243_s8 = sshll.u32 %s685_s25, 4  ;;  %s1244_s8 = int_to_ptr.vmem [resolvable:$true] %s1243_s8 }
 0x740   : > { %s2532_s20 = sld [smem:[#allocation42_spill]]  ;;  %s1233_s14 = scalar_lea.sflag [#allocation6], %s2233_s27 }
 0x746   : > { %s1241_s10 = scalar_lea.hbm %s2532_s20, %s2531_s13  ;;  %s1858_s16 = scalar_lea.hbm %s2532_s20, 2 }
 0x747   : > { %s1245_s0 = sshll.u32 %s1241_s10, 4  ;;  %s1246_s0 = int_to_ptr.hbm [resolvable:$true] %s1245_s0 }
 0x748   : > { %s1852_s30 = sshra.s32 %s1246_s0, 4  ;;  %s1853_s30 = int_to_ptr.hbm [resolvable:$true] %s1852_s30 }
 0x749   : > { %s1854_s28 = scalar_lea.hbm %s1853_s30, 1  ;;  %p1859_p5 = scmp.lt.s32.totalorder %s1853_s30, %s2532_s20 }
 0x74a   : > { %p1855_p12 = scmp.ne.s32.totalorder %s1853_s30, %s1854_s28  ;;  %p1860_p6 = scmp.lt.s32.totalorder %s1858_s16, %s1854_s28 }
 0x74c   : > { %p1856_p13 = pnand %p1855_p12, %p2192_p0  ;;  %p1861_p10 = por %p1860_p6, %p1859_p5 }
 0x74e   : > { %p1857_p4 = pneg %p1856_p13 }
 0x750   : > { %p1862_p1 = pnand %p1861_p10, %p1857_p4 }
 0x752   : > { %1865 = shalt.err (!%p1862_p1)
}
 0x753   : > { %1563 = dma.vmem_to_hbm [thread:$0]  (%p2192_p0), %s1244_s8, 16, %s1246_s0, %s1233_s14  }
 0x754 PF: > { %s2534_s27 = sld [smem:[#allocation18_spill]]  ;;  %p1583_p11 = scmp.ge.s32.totalorder %s1968_s18, 2 }
 0x756   : > { %p1579_p2 = pnand %p1583_p11, %p2199_p3 }
 0x758   : > { %p1580_p8 = pneg %p1579_p2 }
 0x75a   : > { %s1257_s22 = sand.u32 1, %s2534_s27  }
 0x75b   : > { %s1258_s3 = scalar_lea.sflag [#allocation6], %s1257_s22 }
 0x75c   : > { %1923 = dma.done.wait (%p1580_p8), %s1258_s3, 16  }
 0x75d   : > { %1925 = vsyncadd (%p1580_p8), %s1258_s3, 4294967280  ;;  %s35_s18 = sadd.s32 1, %s1968_s18   ;;  %s2536_s21 = sld [smem:[#allocation17_spill]] }
 0x75e   : > { %p32_p7 = scmp.ge.s32.totalorder %s35_s18, 6   ;;  %s2537_s27 = sld [smem:[#allocation25_spill]] }
 0x75f   : > { %s2538_s28 = sld [smem:[#allocation19_spill]]  ;;  %s2545_s25 = smov %s1932_s26 }
 0x760   : > { %s2539_s29 = sld [smem:[#allocation20_spill]] }
 0x761   : > { %s2540_s30 = sld [smem:[#allocation29_spill]]  ;;  %34 = sbr.rel (!%p32_p7) target bundleno = 27 (0x1b), region = 189 }
 0x762   : > { %s2541_s14 = sld [smem:[#allocation22_spill]] }
 0x763   : > { %s2542_s15 = sld [smem:[#allocation23_spill]]  ;;  %s2546_s26 = smov %s2536_s21 }
 0x764   : > { %s2543_s16 = sld [smem:[#allocation24_spill]] }
 0x765   : > { %s2544_s17 = sld [smem:[#allocation26_spill]] }
 0x766   :  { %1263 = vsyncpa [#allocation5], 1 }
 0x767   :  { %1265 = vsyncpa [#allocation5 + $0x1], 1 }
 0x768   :  { %1266 = vsyncpa [#allocation8], 1 }
 0x769   :  { %1268 = vsyncpa [#allocation8 + $0x1], 1 }
 0x76a   :  { %1269 = vsyncpa [#allocation11], 1 }
 0x76b   :  { %1271 = vsyncpa [#allocation11 + $0x1], 1 }
 0x76c   :  { %1272 = vsyncpa [#allocation6], 1 }
 0x76d   :  { %1274 = vsyncpa [#allocation6 + $0x1], 1 }

</bundles_post_ra>
